<compile_context>
chip_gen: v7x
topology: tpu7x:2x2x1
jax: 0.10.0
libtpu: 0.0.40
codegen_flags: <defaults>
</compile_context>

<pallas_src>
import math
from functools import partial

import numpy as np
import jax
import jax.numpy as jnp
from jax.experimental import pallas as pl
from jax.experimental.pallas import tpu as pltpu


# ----------------------------------------------------------------------------------
# Tile-size helpers (avoid wrapper-side padding: pick a tile that divides the extent)
# ----------------------------------------------------------------------------------
def _pick_row_tile(m):
    for t in (128, 64, 32, 16, 8):
        if m % t == 0:
            return t
    return None


def _pick_batch_tile(s):
    for t in (8, 4, 2, 1):
        if s % t == 0:
            return t
    return 1


# ----------------------------------------------------------------------------------
# Fused nconv kernel: 3x Conv2d(1,ks) + relu(c1 + sigmoid(c2) + c3) + a @ x
# ----------------------------------------------------------------------------------
def _nconv_fused_kernel(xp_ref, w_ref, b_ref, a_ref, o_ref, *, ks, cout):
    # xp_ref: [TB, W + ks - 1, C]  (input slabs, zero-padded along the conv axis)
    # w_ref : [ks, C, 3*cout]      (tap-major, the three convs concatenated on N)
    # b_ref : [1, 3*cout]
    # a_ref : [W, W]               (adjacency, contracts the W axis)
    # o_ref : [TB, W, cout]
    TB, W, _ = o_ref.shape
    C = xp_ref.shape[-1]
    xp = xp_ref[...]

    # Conv as ks shifted matmuls on the flattened [TB*W, C] rows (no im2col in HBM).
    acc = jnp.zeros((TB * W, 3 * cout), jnp.float32)
    for i in range(ks):                                   # static unroll over taps
        xi = xp[:, i:i + W, :].reshape(TB * W, C)
        acc = acc + jnp.dot(xi, w_ref[i], preferred_element_type=jnp.float32)
    acc = acc + b_ref[...]                                # fused conv1/conv2/conv3 bias

    c1 = acc[:, :cout]
    c2 = acc[:, cout:2 * cout]
    c3 = acc[:, 2 * cout:]
    g = jnp.maximum(c1 + jax.nn.sigmoid(c2) + c3, 0.0)    # relu(conv1 + sigmoid(conv2) + conv3)

    # Graph propagation a @ g, per slab (TB is small and static; robust 2-D MXU dots).
    adj = a_ref[...]
    for t in range(TB):
        o_ref[t] = jnp.dot(adj, g[t * W:(t + 1) * W, :],
                           preferred_element_type=jnp.float32)


def nconv_fused(x, a, pc, ks):
    """nconv.forward(x, a): x [B, H, W, Cin] feature-last, a [W, W] adjacency."""
    # TODO(synk): only 2-D adjacency handled in-kernel; rank>2 broadcasting of torch.matmul
    # (per-batch adjacency) would need a batched adjacency BlockSpec.
    assert a.ndim == 2
    B, H, W, C = x.shape
    pad = (ks - 1) // 2
    cout = pc['b'].shape[-1] // 3
    S = B * H
    TB = _pick_batch_tile(S)

    # One small zero-pad along the conv axis (replaces the old 5x im2col + NCHW transposes).
    xp = jnp.pad(x.reshape(S, W, C).astype(jnp.float32), ((0, 0), (pad, pad), (0, 0)))
    Wp = W + 2 * pad

    out = pl.pallas_call(
        partial(_nconv_fused_kernel, ks=ks, cout=cout),
        out_shape=jax.ShapeDtypeStruct((S, W, cout), jnp.float32),
        grid_spec=pltpu.PrefetchScalarGridSpec(
            num_scalar_prefetch=0,
            grid=(S // TB,),
            in_specs=[
                pl.BlockSpec((TB, Wp, C), lambda i: (i, 0, 0)),
                pl.BlockSpec((ks, C, 3 * cout), lambda i: (0, 0, 0)),
                pl.BlockSpec((1, 3 * cout), lambda i: (0, 0)),
                pl.BlockSpec((W, W), lambda i: (0, 0)),
            ],
            out_specs=pl.BlockSpec((TB, W, cout), lambda i: (i, 0, 0)),
        ),
        compiler_params=pltpu.CompilerParams(dimension_semantics=("parallel",)),
    )(xp, pc['w'], pc['b'], a.astype(jnp.float32))
    return out.reshape(B, H, W, cout)


# ----------------------------------------------------------------------------------
# Fused concat + Linear kernel: mlp(cat([x0, x1, x2], -1)) without materializing concat
# ----------------------------------------------------------------------------------
def _make_concat_linear_kernel(n_terms):
    def kernel(*refs):
        x_refs = refs[:n_terms]
        w_ref = refs[n_terms]        # [n_terms, K, N]
        b_ref = refs[n_terms + 1]    # [1, N]
        o_ref = refs[n_terms + 2]    # [TM, N]
        acc = jnp.zeros(o_ref.shape, jnp.float32)
        for j in range(n_terms):     # static unroll over concat terms
            acc = acc + jnp.dot(x_refs[j][...], w_ref[j],
                                preferred_element_type=jnp.float32)
        o_ref[...] = (acc + b_ref[...]).astype(o_ref.dtype)
    return kernel


def fused_concat_linear(xs, w_stacked, b):
    """Compute concat(xs, -1) @ concat_k(w_stacked, 0) + b, streaming the terms separately."""
    n_terms = len(xs)
    lead = xs[0].shape[:-1]
    K = xs[0].shape[-1]
    N = w_stacked.shape[-1]
    M = int(np.prod(lead))
    x2s = [x.reshape(M, K).astype(jnp.float32) for x in xs]

    TM = _pick_row_tile(M)
    if TM is None:
        # Ragged / degenerate row count: let XLA fuse the small matmuls instead.
        acc = b
        for j in range(n_terms):
            acc = acc + x2s[j] @ w_stacked[j]
        return acc.reshape(*lead, N)

    out = pl.pallas_call(
        _make_concat_linear_kernel(n_terms),
        out_shape=jax.ShapeDtypeStruct((M, N), jnp.float32),
        grid_spec=pltpu.PrefetchScalarGridSpec(
            num_scalar_prefetch=0,
            grid=(M // TM,),
            in_specs=(
                [pl.BlockSpec((TM, K), lambda i: (i, 0)) for _ in range(n_terms)]
                + [pl.BlockSpec((n_terms, K, N), lambda i: (0, 0, 0)),
                   pl.BlockSpec((1, N), lambda i: (0, 0))]
            ),
            out_specs=pl.BlockSpec((TM, N), lambda i: (i, 0)),
        ),
        compiler_params=pltpu.CompilerParams(dimension_semantics=("parallel",)),
    )(*x2s, w_stacked.astype(jnp.float32), b.reshape(1, N).astype(jnp.float32))
    return out.reshape(*lead, N)


# ----------------------------------------------------------------------------------
# gcn forward (eval mode: dropout == identity)
# ----------------------------------------------------------------------------------
def gcn_forward(p, x, a, gnn_type, ks=5, order=2):
    if gnn_type == 'time':
        x = jnp.swapaxes(x, 1, 2)
    outs = [x]
    x1 = nconv_fused(x, a, p['nconv'], ks)
    outs.append(x1)
    for _ in range(2, order + 1):
        x1 = nconv_fused(x1, a, p['nconv'], ks)
        outs.append(x1)
    h = fused_concat_linear(outs, p['mlp_w'], p['mlp_b'])
    # TODO(synk): exact (erf) GELU epilogue stays in XLA; erf lowering inside Mosaic
    # is not guaranteed, and this elementwise pass is negligible at these sizes.
    h = jax.nn.gelu(h, approximate=False)
    if gnn_type == 'time':
        h = jnp.swapaxes(h, 1, 2)
    return h


# ----------------------------------------------------------------------------------
# Pure-JAX reference (mirrors the PyTorch module math; used for correctness checking)
# ----------------------------------------------------------------------------------
def _nconv_reference(x, a, pc, ks):
    pad = (ks - 1) // 2
    W = x.shape[2]
    cout = pc['b'].shape[-1] // 3
    xp = jnp.pad(x, ((0, 0), (0, 0), (pad, pad), (0, 0)))
    acc = pc['b'][0]
    for i in range(ks):
        acc = acc + jnp.einsum('bhwc,cn->bhwn', xp[:, :, i:i + W, :], pc['w'][i],
                               precision=jax.lax.Precision.HIGHEST)
    c1, c2, c3 = acc[..., :cout], acc[..., cout:2 * cout], acc[..., 2 * cout:]
    g = jnp.maximum(c1 + jax.nn.sigmoid(c2) + c3, 0.0)
    return jnp.einsum('vu,bhuc->bhvc', a, g, precision=jax.lax.Precision.HIGHEST)


def gcn_reference(p, x, a, gnn_type, ks=5, order=2):
    if gnn_type == 'time':
        x = jnp.swapaxes(x, 1, 2)
    outs = [x]
    x1 = _nconv_reference(x, a, p['nconv'], ks)
    outs.append(x1)
    for _ in range(2, order + 1):
        x1 = _nconv_reference(x1, a, p['nconv'], ks)
        outs.append(x1)
    h = jnp.concatenate(outs, axis=-1)
    w_cat = p['mlp_w'].reshape(-1, p['mlp_w'].shape[-1])
    h = jnp.einsum('bhwk,kn->bhwn', h, w_cat,
                   precision=jax.lax.Precision.HIGHEST) + p['mlp_b']
    h = jax.nn.gelu(h, approximate=False)
    if gnn_type == 'time':
        h = jnp.swapaxes(h, 1, 2)
    return h


# ----------------------------------------------------------------------------------
# Deterministic parameter init (PyTorch default uniform(-1/sqrt(fan_in), 1/sqrt(fan_in)))
# ----------------------------------------------------------------------------------
def init_gcn_params(key, c_in, c_out, kernel_size, order):
    kcw, kcb, kmw, kmb = jax.random.split(key, 4)
    fan_conv = c_in * kernel_size
    bnd = 1.0 / math.sqrt(fan_conv)
    # Three Conv2d(c_in, c_out, (1, ks)) weights in torch layout [3, Cout, Cin, ks] ...
    w_all = jax.random.uniform(kcw, (3, c_out, c_in, kernel_size), jnp.float32, -bnd, bnd)
    b_all = jax.random.uniform(kcb, (3, c_out), jnp.float32, -bnd, bnd)
    # ... rearranged to the fused tap-major layout [ks, Cin, 3*Cout].
    w_fused = jnp.transpose(w_all, (3, 2, 0, 1)).reshape(kernel_size, c_in, 3 * c_out)
    b_fused = b_all.reshape(1, 3 * c_out)

    fan_mlp = (order + 1) * c_in
    bnd2 = 1.0 / math.sqrt(fan_mlp)
    # Linear((order+1)*c_in, c_out) weight, stored transposed and split per concat term.
    mlp_w = jax.random.uniform(kmw, (order + 1, c_in, c_out), jnp.float32, -bnd2, bnd2)
    mlp_b = jax.random.uniform(kmb, (c_out,), jnp.float32, -bnd2, bnd2)
    return {'nconv': {'w': w_fused, 'b': b_fused}, 'mlp_w': mlp_w, 'mlp_b': mlp_b}


# ----------------------------------------------------------------------------------
if __name__ == "__main__":
    KS, ORDER = 5, 2
    B, L, N, C = 2, 16, 8, 32        # batch, time-graph nodes, spatial rows, channels

    key = jax.random.PRNGKey(0)
    kp, kx, kat, kan = jax.random.split(key, 4)
    params = init_gcn_params(kp, c_in=C, c_out=C, kernel_size=KS, order=ORDER)

    x = jax.random.normal(kx, (B, L, N, C), jnp.float32)
    # Adjacencies over the axis that torch.matmul(a, x) contracts inside nconv.
    a_time = jax.nn.softmax(jax.random.normal(kat, (L, L), jnp.float32), axis=-1)
    a_node = jax.nn.softmax(jax.random.normal(kan, (N, N), jnp.float32), axis=-1)

    fwd_time = jax.jit(lambda p, xx, aa: gcn_forward(p, xx, aa, 'time', ks=KS, order=ORDER))
    fwd_node = jax.jit(lambda p, xx, aa: gcn_forward(p, xx, aa, 'nodes', ks=KS, order=ORDER))

    out_t = jax.block_until_ready(fwd_time(params, x, a_time))
    out_n = jax.block_until_ready(fwd_node(params, x, a_node))

    assert out_t.shape == (B, L, N, C), out_t.shape
    assert out_n.shape == (B, L, N, C), out_n.shape

    ref_t = gcn_reference(params, x, a_time, 'time', ks=KS, order=ORDER)
    ref_n = gcn_reference(params, x, a_node, 'nodes', ks=KS, order=ORDER)
    np.testing.assert_allclose(np.asarray(out_t), np.asarray(ref_t), rtol=1e-2, atol=1e-2)
    np.testing.assert_allclose(np.asarray(out_n), np.asarray(ref_n), rtol=1e-2, atol=1e-2)
    assert bool(jnp.all(jnp.isfinite(out_t))) and bool(jnp.all(jnp.isfinite(out_n)))
    print("KERNEL_OK")
</pallas_src>

<mosaic_0001>
module attributes {stable_mosaic.version = 11 : i64} {
  func.func @kernel(%arg0: i32, %arg1: memref<128x32xf32, #tpu.memory_space<vmem>>, %arg2: memref<128x32xf32, #tpu.memory_space<vmem>>, %arg3: memref<128x32xf32, #tpu.memory_space<vmem>>, %arg4: memref<3x32x32xf32, #tpu.memory_space<vmem>>, %arg5: memref<1x32xf32, #tpu.memory_space<vmem>>, %arg6: memref<128x32xf32, #tpu.memory_space<vmem>>) attributes {dimension_semantics = [#tpu.dimension_semantics<parallel>], iteration_bounds = array<i64: 2>, scalar_prefetch = 0 : i64, scratch_operands = 0 : i64, tpu.core_type = #tpu.core_type<tc>, window_params = [{transform_indices = @transform_0, window_bounds = array<i64: 128, 32>}, {transform_indices = @transform_1, window_bounds = array<i64: 128, 32>}, {transform_indices = @transform_2, window_bounds = array<i64: 128, 32>}, {pipeline_mode = #tpu.pipeline_mode<synchronous>, transform_indices = @transform_3, window_bounds = array<i64: 3, 32, 32>}, {pipeline_mode = #tpu.pipeline_mode<synchronous>, transform_indices = @transform_4, window_bounds = array<i64: 1, 32>}, {transform_indices = @transform_5, window_bounds = array<i64: 128, 32>}]} {
    %cst = arith.constant 0.000000e+00 : f32
    %0 = vector.broadcast %cst : f32 to vector<128x32xf32>
    %c0 = arith.constant 0 : index
    %c0_0 = arith.constant 0 : index
    %1 = vector.load %arg1[%c0, %c0_0] : memref<128x32xf32, #tpu.memory_space<vmem>>, vector<128x32xf32>
    %c0_1 = arith.constant 0 : index
    %c0_2 = arith.constant 0 : index
    %c0_3 = arith.constant 0 : index
    %2 = vector.load %arg4[%c0_1, %c0_2, %c0_3] : memref<3x32x32xf32, #tpu.memory_space<vmem>>, vector<1x32x32xf32>
    %3 = vector.shape_cast %2 : vector<1x32x32xf32> to vector<32x32xf32>
    %cst_4 = arith.constant dense<0.000000e+00> : vector<128x32xf32>
    %4 = tpu.matmul %1, %3, %cst_4 {dimension_numbers = #tpu.dot_dimension_numbers<[1], [0], [0], [1], [0, 0, 1, 1], [], []>} : vector<128x32xf32>, vector<32x32xf32>, vector<128x32xf32> -> vector<128x32xf32>
    %5 = arith.addf %0, %4 : vector<128x32xf32>
    %c0_5 = arith.constant 0 : index
    %c0_6 = arith.constant 0 : index
    %6 = vector.load %arg2[%c0_5, %c0_6] : memref<128x32xf32, #tpu.memory_space<vmem>>, vector<128x32xf32>
    %c1 = arith.constant 1 : index
    %c0_7 = arith.constant 0 : index
    %c0_8 = arith.constant 0 : index
    %7 = vector.load %arg4[%c1, %c0_7, %c0_8] : memref<3x32x32xf32, #tpu.memory_space<vmem>>, vector<1x32x32xf32>
    %8 = vector.shape_cast %7 : vector<1x32x32xf32> to vector<32x32xf32>
    %cst_9 = arith.constant dense<0.000000e+00> : vector<128x32xf32>
    %9 = tpu.matmul %6, %8, %cst_9 {dimension_numbers = #tpu.dot_dimension_numbers<[1], [0], [0], [1], [0, 0, 1, 1], [], []>} : vector<128x32xf32>, vector<32x32xf32>, vector<128x32xf32> -> vector<128x32xf32>
    %10 = arith.addf %5, %9 : vector<128x32xf32>
    %c0_10 = arith.constant 0 : index
    %c0_11 = arith.constant 0 : index
    %11 = vector.load %arg3[%c0_10, %c0_11] : memref<128x32xf32, #tpu.memory_space<vmem>>, vector<128x32xf32>
    %c2 = arith.constant 2 : index
    %c0_12 = arith.constant 0 : index
    %c0_13 = arith.constant 0 : index
    %12 = vector.load %arg4[%c2, %c0_12, %c0_13] : memref<3x32x32xf32, #tpu.memory_space<vmem>>, vector<1x32x32xf32>
    %13 = vector.shape_cast %12 : vector<1x32x32xf32> to vector<32x32xf32>
    %cst_14 = arith.constant dense<0.000000e+00> : vector<128x32xf32>
    %14 = tpu.matmul %11, %13, %cst_14 {dimension_numbers = #tpu.dot_dimension_numbers<[1], [0], [0], [1], [0, 0, 1, 1], [], []>} : vector<128x32xf32>, vector<32x32xf32>, vector<128x32xf32> -> vector<128x32xf32>
    %15 = arith.addf %10, %14 : vector<128x32xf32>
    %c0_15 = arith.constant 0 : index
    %c0_16 = arith.constant 0 : index
    %16 = vector.load %arg5[%c0_15, %c0_16] : memref<1x32xf32, #tpu.memory_space<vmem>>, vector<1x32xf32>
    %17 = vector.broadcast %16 : vector<1x32xf32> to vector<128x32xf32>
    %18 = arith.addf %15, %17 : vector<128x32xf32>
    %c0_17 = arith.constant 0 : index
    %c0_18 = arith.constant 0 : index
    %19 = vector.load %arg6[%c0_17, %c0_18] : memref<128x32xf32, #tpu.memory_space<vmem>>, vector<128x32xf32>
    tpu.vector_store %arg6[%c0_17, %c0_18], %18 {strides = array<i32>} : memref<128x32xf32, #tpu.memory_space<vmem>>, vector<128x32xf32>,
    return
  }
  func.func @transform_0(%arg0: i32) -> (i32, i32) {
    %c0_i32 = arith.constant 0 : i32
    %c0_i32_0 = arith.constant 0 : i32
    return %arg0, %c0_i32 : i32, i32
  }
  func.func @transform_1(%arg0: i32) -> (i32, i32) {
    %c0_i32 = arith.constant 0 : i32
    %c0_i32_0 = arith.constant 0 : i32
    return %arg0, %c0_i32 : i32, i32
  }
  func.func @transform_2(%arg0: i32) -> (i32, i32) {
    %c0_i32 = arith.constant 0 : i32
    %c0_i32_0 = arith.constant 0 : i32
    return %arg0, %c0_i32 : i32, i32
  }
  func.func @transform_3(%arg0: i32) -> (i32, i32, i32) {
    %c0_i32 = arith.constant 0 : i32
    %c0_i32_0 = arith.constant 0 : i32
    %c0_i32_1 = arith.constant 0 : i32
    %c0_i32_2 = arith.constant 0 : i32
    return %c0_i32, %c0_i32_0, %c0_i32_1 : i32, i32, i32
  }
  func.func @transform_4(%arg0: i32) -> (i32, i32) {
    %c0_i32 = arith.constant 0 : i32
    %c0_i32_0 = arith.constant 0 : i32
    %c0_i32_1 = arith.constant 0 : i32
    return %c0_i32, %c0_i32_0 : i32, i32
  }
  func.func @transform_5(%arg0: i32) -> (i32, i32) {
    %c0_i32 = arith.constant 0 : i32
    %c0_i32_0 = arith.constant 0 : i32
    return %arg0, %c0_i32 : i32, i32
  }
}

module attributes {stable_mosaic.version = 11 : i64} {
  func.func @_nconv_fused_kernel(%arg0: i32, %arg1: memref<8x20x32xf32, #tpu.memory_space<vmem>>, %arg2: memref<5x32x96xf32, #tpu.memory_space<vmem>>, %arg3: memref<1x96xf32, #tpu.memory_space<vmem>>, %arg4: memref<16x16xf32, #tpu.memory_space<vmem>>, %arg5: memref<8x16x32xf32, #tpu.memory_space<vmem>>) attributes {dimension_semantics = [#tpu.dimension_semantics<parallel>], iteration_bounds = array<i64: 2>, scalar_prefetch = 0 : i64, scratch_operands = 0 : i64, tpu.core_type = #tpu.core_type<tc>, window_params = [{transform_indices = @transform_0, window_bounds = array<i64: 8, 20, 32>}, {pipeline_mode = #tpu.pipeline_mode<synchronous>, transform_indices = @transform_1, window_bounds = array<i64: 5, 32, 96>}, {pipeline_mode = #tpu.pipeline_mode<synchronous>, transform_indices = @transform_2, window_bounds = array<i64: 1, 96>}, {pipeline_mode = #tpu.pipeline_mode<synchronous>, transform_indices = @transform_3, window_bounds = array<i64: 16, 16>}, {transform_indices = @transform_4, window_bounds = array<i64: 8, 16, 32>}]} {
    %c0 = arith.constant 0 : index
    %c0_0 = arith.constant 0 : index
    %c0_1 = arith.constant 0 : index
    %0 = vector.load %arg1[%c0, %c0_0, %c0_1] : memref<8x20x32xf32, #tpu.memory_space<vmem>>, vector<8x20x32xf32>
    %cst = arith.constant 0.000000e+00 : f32
    %1 = vector.broadcast %cst : f32 to vector<128x96xf32>
    %2 = vector.extract_strided_slice %0 {offsets = [0, 0, 0], sizes = [8, 16, 32], strides = [1, 1, 1]} : vector<8x20x32xf32> to vector<8x16x32xf32>
    %3 = vector.shape_cast %2 : vector<8x16x32xf32> to vector<128x32xf32>
    %c0_2 = arith.constant 0 : index
    %c0_3 = arith.constant 0 : index
    %c0_4 = arith.constant 0 : index
    %4 = vector.load %arg2[%c0_2, %c0_3, %c0_4] : memref<5x32x96xf32, #tpu.memory_space<vmem>>, vector<1x32x96xf32>
    %5 = vector.shape_cast %4 : vector<1x32x96xf32> to vector<32x96xf32>
    %cst_5 = arith.constant dense<0.000000e+00> : vector<128x96xf32>
    %6 = tpu.matmul %3, %5, %cst_5 {dimension_numbers = #tpu.dot_dimension_numbers<[1], [0], [0], [1], [0, 0, 1, 1], [], []>} : vector<128x32xf32>, vector<32x96xf32>, vector<128x96xf32> -> vector<128x96xf32>
    %7 = arith.addf %1, %6 : vector<128x96xf32>
    %8 = vector.extract_strided_slice %0 {offsets = [0, 1, 0], sizes = [8, 16, 32], strides = [1, 1, 1]} : vector<8x20x32xf32> to vector<8x16x32xf32>
    %9 = vector.shape_cast %8 : vector<8x16x32xf32> to vector<128x32xf32>
    %c1 = arith.constant 1 : index
    %c0_6 = arith.constant 0 : index
    %c0_7 = arith.constant 0 : index
    %10 = vector.load %arg2[%c1, %c0_6, %c0_7] : memref<5x32x96xf32, #tpu.memory_space<vmem>>, vector<1x32x96xf32>
    %11 = vector.shape_cast %10 : vector<1x32x96xf32> to vector<32x96xf32>
    %cst_8 = arith.constant dense<0.000000e+00> : vector<128x96xf32>
    %12 = tpu.matmul %9, %11, %cst_8 {dimension_numbers = #tpu.dot_dimension_numbers<[1], [0], [0], [1], [0, 0, 1, 1], [], []>} : vector<128x32xf32>, vector<32x96xf32>, vector<128x96xf32> -> vector<128x96xf32>
    %13 = arith.addf %7, %12 : vector<128x96xf32>
    %14 = vector.extract_strided_slice %0 {offsets = [0, 2, 0], sizes = [8, 16, 32], strides = [1, 1, 1]} : vector<8x20x32xf32> to vector<8x16x32xf32>
    %15 = vector.shape_cast %14 : vector<8x16x32xf32> to vector<128x32xf32>
    %c2 = arith.constant 2 : index
    %c0_9 = arith.constant 0 : index
    %c0_10 = arith.constant 0 : index
    %16 = vector.load %arg2[%c2, %c0_9, %c0_10] : memref<5x32x96xf32, #tpu.memory_space<vmem>>, vector<1x32x96xf32>
    %17 = vector.shape_cast %16 : vector<1x32x96xf32> to vector<32x96xf32>
    %cst_11 = arith.constant dense<0.000000e+00> : vector<128x96xf32>
    %18 = tpu.matmul %15, %17, %cst_11 {dimension_numbers = #tpu.dot_dimension_numbers<[1], [0], [0], [1], [0, 0, 1, 1], [], []>} : vector<128x32xf32>, vector<32x96xf32>, vector<128x96xf32> -> vector<128x96xf32>
    %19 = arith.addf %13, %18 : vector<128x96xf32>
    %20 = vector.extract_strided_slice %0 {offsets = [0, 3, 0], sizes = [8, 16, 32], strides = [1, 1, 1]} : vector<8x20x32xf32> to vector<8x16x32xf32>
    %21 = vector.shape_cast %20 : vector<8x16x32xf32> to vector<128x32xf32>
    %c3 = arith.constant 3 : index
    %c0_12 = arith.constant 0 : index
    %c0_13 = arith.constant 0 : index
    %22 = vector.load %arg2[%c3, %c0_12, %c0_13] : memref<5x32x96xf32, #tpu.memory_space<vmem>>, vector<1x32x96xf32>
    %23 = vector.shape_cast %22 : vector<1x32x96xf32> to vector<32x96xf32>
    %cst_14 = arith.constant dense<0.000000e+00> : vector<128x96xf32>
    %24 = tpu.matmul %21, %23, %cst_14 {dimension_numbers = #tpu.dot_dimension_numbers<[1], [0], [0], [1], [0, 0, 1, 1], [], []>} : vector<128x32xf32>, vector<32x96xf32>, vector<128x96xf32> -> vector<128x96xf32>
    %25 = arith.addf %19, %24 : vector<128x96xf32>
    %26 = vector.extract_strided_slice %0 {offsets = [0, 4, 0], sizes = [8, 16, 32], strides = [1, 1, 1]} : vector<8x20x32xf32> to vector<8x16x32xf32>
    %27 = vector.shape_cast %26 : vector<8x16x32xf32> to vector<128x32xf32>
    %c4 = arith.constant 4 : index
    %c0_15 = arith.constant 0 : index
    %c0_16 = arith.constant 0 : index
    %28 = vector.load %arg2[%c4, %c0_15, %c0_16] : memref<5x32x96xf32, #tpu.memory_space<vmem>>, vector<1x32x96xf32>
    %29 = vector.shape_cast %28 : vector<1x32x96xf32> to vector<32x96xf32>
    %cst_17 = arith.constant dense<0.000000e+00> : vector<128x96xf32>
    %30 = tpu.matmul %27, %29, %cst_17 {dimension_numbers = #tpu.dot_dimension_numbers<[1], [0], [0], [1], [0, 0, 1, 1], [], []>} : vector<128x32xf32>, vector<32x96xf32>, vector<128x96xf32> -> vector<128x96xf32>
    %31 = arith.addf %25, %30 : vector<128x96xf32>
    %c0_18 = arith.constant 0 : index
    %c0_19 = arith.constant 0 : index
    %32 = vector.load %arg3[%c0_18, %c0_19] : memref<1x96xf32, #tpu.memory_space<vmem>>, vector<1x96xf32>
    %33 = vector.broadcast %32 : vector<1x96xf32> to vector<128x96xf32>
    %34 = arith.addf %31, %33 : vector<128x96xf32>
    %35 = vector.extract_strided_slice %34 {offsets = [0, 0], sizes = [128, 32], strides = [1, 1]} : vector<128x96xf32> to vector<128x32xf32>
    %36 = vector.extract_strided_slice %34 {offsets = [0, 32], sizes = [128, 32], strides = [1, 1]} : vector<128x96xf32> to vector<128x32xf32>
    %37 = vector.extract_strided_slice %34 {offsets = [0, 64], sizes = [128, 32], strides = [1, 1]} : vector<128x96xf32> to vector<128x32xf32>
    %38 = arith.negf %36 : vector<128x32xf32>
    %39 = math.exp %38 : vector<128x32xf32>
    %cst_20 = arith.constant 1.000000e+00 : f32
    %40 = vector.broadcast %cst_20 : f32 to vector<128x32xf32>
    %41 = arith.addf %40, %39 : vector<128x32xf32>
    %42 = arith.divf %40, %41 : vector<128x32xf32>
    %43 = arith.addf %35, %42 : vector<128x32xf32>
    %44 = arith.addf %43, %37 : vector<128x32xf32>
    %cst_21 = arith.constant 0.000000e+00 : f32
    %45 = vector.broadcast %cst_21 : f32 to vector<128x32xf32>
    %46 = arith.maximumf %44, %45 : vector<128x32xf32>
    %c0_22 = arith.constant 0 : index
    %c0_23 = arith.constant 0 : index
    %47 = vector.load %arg4[%c0_22, %c0_23] : memref<16x16xf32, #tpu.memory_space<vmem>>, vector<16x16xf32>
    %48 = vector.extract_strided_slice %46 {offsets = [0, 0], sizes = [16, 32], strides = [1, 1]} : vector<128x32xf32> to vector<16x32xf32>
    %cst_24 = arith.constant dense<0.000000e+00> : vector<16x32xf32>
    %49 = tpu.matmul %47, %48, %cst_24 {dimension_numbers = #tpu.dot_dimension_numbers<[1], [0], [0], [1], [0, 0, 1, 1], [], []>} : vector<16x16xf32>, vector<16x32xf32>, vector<16x32xf32> -> vector<16x32xf32>
    %c0_25 = arith.constant 0 : index
    %c0_26 = arith.constant 0 : index
    %c0_27 = arith.constant 0 : index
    %50 = vector.load %arg5[%c0_25, %c0_26, %c0_27] : memref<8x16x32xf32, #tpu.memory_space<vmem>>, vector<1x16x32xf32>
    %51 = vector.shape_cast %50 : vector<1x16x32xf32> to vector<16x32xf32>
    %52 = vector.shape_cast %49 : vector<16x32xf32> to vector<1x16x32xf32>
    tpu.vector_store %arg5[%c0_25, %c0_26, %c0_27], %52 {strides = array<i32>} : memref<8x16x32xf32, #tpu.memory_space<vmem>>, vector<1x16x32xf32>,
    %53 = vector.extract_strided_slice %46 {offsets = [16, 0], sizes = [16, 32], strides = [1, 1]} : vector<128x32xf32> to vector<16x32xf32>
    %cst_28 = arith.constant dense<0.000000e+00> : vector<16x32xf32>
    %54 = tpu.matmul %47, %53, %cst_28 {dimension_numbers = #tpu.dot_dimension_numbers<[1], [0], [0], [1], [0, 0, 1, 1], [], []>} : vector<16x16xf32>, vector<16x32xf32>, vector<16x32xf32> -> vector<16x32xf32>
    %c1_29 = arith.constant 1 : index
    %c0_30 = arith.constant 0 : index
    %c0_31 = arith.constant 0 : index
    %55 = vector.load %arg5[%c1_29, %c0_30, %c0_31] : memref<8x16x32xf32, #tpu.memory_space<vmem>>, vector<1x16x32xf32>
    %56 = vector.shape_cast %55 : vector<1x16x32xf32> to vector<16x32xf32>
    %57 = vector.shape_cast %54 : vector<16x32xf32> to vector<1x16x32xf32>
    tpu.vector_store %arg5[%c1_29, %c0_30, %c0_31], %57 {strides = array<i32>} : memref<8x16x32xf32, #tpu.memory_space<vmem>>, vector<1x16x32xf32>,
    %58 = vector.extract_strided_slice %46 {offsets = [32, 0], sizes = [16, 32], strides = [1, 1]} : vector<128x32xf32> to vector<16x32xf32>
    %cst_32 = arith.constant dense<0.000000e+00> : vector<16x32xf32>
    %59 = tpu.matmul %47, %58, %cst_32 {dimension_numbers = #tpu.dot_dimension_numbers<[1], [0], [0], [1], [0, 0, 1, 1], [], []>} : vector<16x16xf32>, vector<16x32xf32>, vector<16x32xf32> -> vector<16x32xf32>
    %c2_33 = arith.constant 2 : index
    %c0_34 = arith.constant 0 : index
    %c0_35 = arith.constant 0 : index
    %60 = vector.load %arg5[%c2_33, %c0_34, %c0_35] : memref<8x16x32xf32, #tpu.memory_space<vmem>>, vector<1x16x32xf32>
    %61 = vector.shape_cast %60 : vector<1x16x32xf32> to vector<16x32xf32>
    %62 = vector.shape_cast %59 : vector<16x32xf32> to vector<1x16x32xf32>
    tpu.vector_store %arg5[%c2_33, %c0_34, %c0_35], %62 {strides = array<i32>} : memref<8x16x32xf32, #tpu.memory_space<vmem>>, vector<1x16x32xf32>,
    %63 = vector.extract_strided_slice %46 {offsets = [48, 0], sizes = [16, 32], strides = [1, 1]} : vector<128x32xf32> to vector<16x32xf32>
    %cst_36 = arith.constant dense<0.000000e+00> : vector<16x32xf32>
    %64 = tpu.matmul %47, %63, %cst_36 {dimension_numbers = #tpu.dot_dimension_numbers<[1], [0], [0], [1], [0, 0, 1, 1], [], []>} : vector<16x16xf32>, vector<16x32xf32>, vector<16x32xf32> -> vector<16x32xf32>
    %c3_37 = arith.constant 3 : index
    %c0_38 = arith.constant 0 : index
    %c0_39 = arith.constant 0 : index
    %65 = vector.load %arg5[%c3_37, %c0_38, %c0_39] : memref<8x16x32xf32, #tpu.memory_space<vmem>>, vector<1x16x32xf32>
    %66 = vector.shape_cast %65 : vector<1x16x32xf32> to vector<16x32xf32>
    %67 = vector.shape_cast %64 : vector<16x32xf32> to vector<1x16x32xf32>
    tpu.vector_store %arg5[%c3_37, %c0_38, %c0_39], %67 {strides = array<i32>} : memref<8x16x32xf32, #tpu.memory_space<vmem>>, vector<1x16x32xf32>,
    %68 = vector.extract_strided_slice %46 {offsets = [64, 0], sizes = [16, 32], strides = [1, 1]} : vector<128x32xf32> to vector<16x32xf32>
    %cst_40 = arith.constant dense<0.000000e+00> : vector<16x32xf32>
    %69 = tpu.matmul %47, %68, %cst_40 {dimension_numbers = #tpu.dot_dimension_numbers<[1], [0], [0], [1], [0, 0, 1, 1], [], []>} : vector<16x16xf32>, vector<16x32xf32>, vector<16x32xf32> -> vector<16x32xf32>
    %c4_41 = arith.constant 4 : index
    %c0_42 = arith.constant 0 : index
    %c0_43 = arith.constant 0 : index
    %70 = vector.load %arg5[%c4_41, %c0_42, %c0_43] : memref<8x16x32xf32, #tpu.memory_space<vmem>>, vector<1x16x32xf32>
    %71 = vector.shape_cast %70 : vector<1x16x32xf32> to vector<16x32xf32>
    %72 = vector.shape_cast %69 : vector<16x32xf32> to vector<1x16x32xf32>
    tpu.vector_store %arg5[%c4_41, %c0_42, %c0_43], %72 {strides = array<i32>} : memref<8x16x32xf32, #tpu.memory_space<vmem>>, vector<1x16x32xf32>,
    %73 = vector.extract_strided_slice %46 {offsets = [80, 0], sizes = [16, 32], strides = [1, 1]} : vector<128x32xf32> to vector<16x32xf32>
    %cst_44 = arith.constant dense<0.000000e+00> : vector<16x32xf32>
    %74 = tpu.matmul %47, %73, %cst_44 {dimension_numbers = #tpu.dot_dimension_numbers<[1], [0], [0], [1], [0, 0, 1, 1], [], []>} : vector<16x16xf32>, vector<16x32xf32>, vector<16x32xf32> -> vector<16x32xf32>
    %c5 = arith.constant 5 : index
    %c0_45 = arith.constant 0 : index
    %c0_46 = arith.constant 0 : index
    %75 = vector.load %arg5[%c5, %c0_45, %c0_46] : memref<8x16x32xf32, #tpu.memory_space<vmem>>, vector<1x16x32xf32>
    %76 = vector.shape_cast %75 : vector<1x16x32xf32> to vector<16x32xf32>
    %77 = vector.shape_cast %74 : vector<16x32xf32> to vector<1x16x32xf32>
    tpu.vector_store %arg5[%c5, %c0_45, %c0_46], %77 {strides = array<i32>} : memref<8x16x32xf32, #tpu.memory_space<vmem>>, vector<1x16x32xf32>,
    %78 = vector.extract_strided_slice %46 {offsets = [96, 0], sizes = [16, 32], strides = [1, 1]} : vector<128x32xf32> to vector<16x32xf32>
    %cst_47 = arith.constant dense<0.000000e+00> : vector<16x32xf32>
    %79 = tpu.matmul %47, %78, %cst_47 {dimension_numbers = #tpu.dot_dimension_numbers<[1], [0], [0], [1], [0, 0, 1, 1], [], []>} : vector<16x16xf32>, vector<16x32xf32>, vector<16x32xf32> -> vector<16x32xf32>
    %c6 = arith.constant 6 : index
    %c0_48 = arith.constant 0 : index
    %c0_49 = arith.constant 0 : index
    %80 = vector.load %arg5[%c6, %c0_48, %c0_49] : memref<8x16x32xf32, #tpu.memory_space<vmem>>, vector<1x16x32xf32>
    %81 = vector.shape_cast %80 : vector<1x16x32xf32> to vector<16x32xf32>
    %82 = vector.shape_cast %79 : vector<16x32xf32> to vector<1x16x32xf32>
    tpu.vector_store %arg5[%c6, %c0_48, %c0_49], %82 {strides = array<i32>} : memref<8x16x32xf32, #tpu.memory_space<vmem>>, vector<1x16x32xf32>,
    %83 = vector.extract_strided_slice %46 {offsets = [112, 0], sizes = [16, 32], strides = [1, 1]} : vector<128x32xf32> to vector<16x32xf32>
    %cst_50 = arith.constant dense<0.000000e+00> : vector<16x32xf32>
    %84 = tpu.matmul %47, %83, %cst_50 {dimension_numbers = #tpu.dot_dimension_numbers<[1], [0], [0], [1], [0, 0, 1, 1], [], []>} : vector<16x16xf32>, vector<16x32xf32>, vector<16x32xf32> -> vector<16x32xf32>
    %c7 = arith.constant 7 : index
    %c0_51 = arith.constant 0 : index
    %c0_52 = arith.constant 0 : index
    %85 = vector.load %arg5[%c7, %c0_51, %c0_52] : memref<8x16x32xf32, #tpu.memory_space<vmem>>, vector<1x16x32xf32>
    %86 = vector.shape_cast %85 : vector<1x16x32xf32> to vector<16x32xf32>
    %87 = vector.shape_cast %84 : vector<16x32xf32> to vector<1x16x32xf32>
    tpu.vector_store %arg5[%c7, %c0_51, %c0_52], %87 {strides = array<i32>} : memref<8x16x32xf32, #tpu.memory_space<vmem>>, vector<1x16x32xf32>,
    return
  }
  func.func @transform_0(%arg0: i32) -> (i32, i32, i32) {
    %c0_i32 = arith.constant 0 : i32
    %c0_i32_0 = arith.constant 0 : i32
    %c0_i32_1 = arith.constant 0 : i32
    return %arg0, %c0_i32, %c0_i32_0 : i32, i32, i32
  }
  func.func @transform_1(%arg0: i32) -> (i32, i32, i32) {
    %c0_i32 = arith.constant 0 : i32
    %c0_i32_0 = arith.constant 0 : i32
    %c0_i32_1 = arith.constant 0 : i32
    %c0_i32_2 = arith.constant 0 : i32
    return %c0_i32, %c0_i32_0, %c0_i32_1 : i32, i32, i32
  }
  func.func @transform_2(%arg0: i32) -> (i32, i32) {
    %c0_i32 = arith.constant 0 : i32
    %c0_i32_0 = arith.constant 0 : i32
    %c0_i32_1 = arith.constant 0 : i32
    return %c0_i32, %c0_i32_0 : i32, i32
  }
  func.func @transform_3(%arg0: i32) -> (i32, i32) {
    %c0_i32 = arith.constant 0 : i32
    %c0_i32_0 = arith.constant 0 : i32
    %c0_i32_1 = arith.constant 0 : i32
    return %c0_i32, %c0_i32_0 : i32, i32
  }
  func.func @transform_4(%arg0: i32) -> (i32, i32, i32) {
    %c0_i32 = arith.constant 0 : i32
    %c0_i32_0 = arith.constant 0 : i32
    %c0_i32_1 = arith.constant 0 : i32
    return %arg0, %c0_i32, %c0_i32_0 : i32, i32, i32
  }
}

</mosaic_0001>

<bundles_post_ra>
// kernel: _lambda_.5
= control target key start
LH: loop header
LB: loop body
LE: loop exit
PB: predicated region body
PF: predicated region fallthrough
CT: control target
= control target key end

     0   :  { %s1383_s18 = smov 0   ;;  %s1605_s0 = inlined_call_operand.vmem [shape: f32[256,32], index: 0, kind: input, shape index: {}]   ;;  %s1606_s1 = inlined_call_operand.vmem [shape: f32[256,32], index: 1, kind: input, shape index: {}]   ;;  %s1607_s2 = inlined_call_operand.vmem [shape: f32[256,32], index: 2, kind: input, shape index: {}]   ;;  %s1608_s3 = inlined_call_operand.vmem [shape: f32[3,32,32], index: 3, kind: input, shape index: {}]   ;;  %s1609_s4 = inlined_call_operand.vmem [shape: f32[1,32], index: 4, kind: input, shape index: {}]   ;;  %s1610_s5 = inlined_call_operand.vmem [shape: f32[256,32], index: 5, kind: output, shape index: {}]  }
   0x1 LB: > { %s1049_s19 = sadd.s32 4294967295, %s1351_s18   ;;  %p1053_p0 = scmp.ge.s32.totalorder %s1351_s18, 1  ;;  %s1351_s18 = sphi %s1383_s18, %s15_s18  }
   0x2   : > { %p210_p1 = scmp.lt.s32.totalorder %s1351_s18, 3 }
   0x4   : > { %p211_p2 = pnand %p1053_p0, %p210_p1 }
   0x5   : > { %v1062_v0 = vld [vmem:[%s1608_s3 + $0x20] sm:$0xff] (!%p211_p2)  ;;  %v1063_v1 = vld [vmem:[%s1608_s3 + $0x28] sm:$0xff] (!%p211_p2)  ;;  %s1054_s26 = sshll.u32 (!%p211_p2), %s1049_s19, 4  ;;  %v1064_v5 = vld [vmem:[%s1608_s3 + $0x30] sm:$0xff] (!%p211_p2)  ;;  %vm313_vm0 = vcmask (!%p211_p2), 261120  }
   0x6   : > { %214 = sbr.rel (%p211_p2) target bundleno = 281 (0x119), region = 40  ;;  %v288_v2 = vld [vmem:[%s1608_s3] sm:$0xff] (!%p211_p2)  ;;  %v1277_v3 = vpack.c.bf16 (!%p211_p2), %v1063_v1, %v1062_v0  ;;  %v289_v4 = vld [vmem:[%s1608_s3 + $0x8] sm:$0xff] (!%p211_p2)  ;;  %v1065_v6 = vld [vmem:[%s1608_s3 + $0x38] sm:$0xff] (!%p211_p2)  ;;  %p249_p3 = scmp.lt.s32.totalorder (!%p211_p2), %s1054_s26, 31 }
   0x7   : > { %v1285_v7 = vpack.c.bf16 (!%p211_p2), %v289_v4, %v288_v2  ;;  %v1281_v8 = vpack.c.bf16 (!%p211_p2), %v1065_v6, %v1064_v5  ;;  %v290_v9 = vld [vmem:[%s1608_s3 + $0x10] sm:$0xff] (!%p211_p2)  ;;  %v291_v10 = vld [vmem:[%s1608_s3 + $0x18] sm:$0xff] (!%p211_p2)  ;;  %v1098_v12 = vld [vmem:[%s1608_s3 + $0x40] sm:$0xff] (!%p211_p2) }
   0x8   : > { %1278 = vmatprep.subr.bf16.mxu1 (!%p211_p2), %v1277_v3  ;;  %v1289_v11 = vpack.c.bf16 (!%p211_p2), %v291_v10, %v290_v9  ;;  %v1099_v13 = vld [vmem:[%s1608_s3 + $0x48] sm:$0xff] (!%p211_p2)  ;;  %v1100_v15 = vld [vmem:[%s1608_s3 + $0x50] sm:$0xff] (!%p211_p2)  ;;  %v1101_v18 = vld [vmem:[%s1608_s3 + $0x58] sm:$0xff] (!%p211_p2) }
   0x9   : > { %1286 = vmatprep.subr.bf16.mxu0 (!%p211_p2), %v1285_v7  ;;  %1280 = vmatpush3.bf16.msra.mxu1 (!%p211_p2), %v1277_v3  ;;  %v1293_v14 = vpack.c.bf16 (!%p211_p2), %v1099_v13, %v1098_v12  ;;  %v1297_v22 = vpack.c.bf16 (!%p211_p2), %v1101_v18, %v1100_v15 }
   0xa   : > { %1288 = vmatpush3.bf16.msra.mxu0 (!%p211_p2), %v1285_v7  ;;  %1282 = vmatprep.subr.bf16.mxu1 (!%p211_p2), %v1281_v8 }
   0xb   : > { %1290 = vmatprep.subr.bf16.mxu0 (!%p211_p2), %v1289_v11 }
   0xd   : > { %s1612_s26 = smov (!%p249_p3, %s1054_s26), 31  ;;  %1284 = vmatpush3.bf16.msra.mxu1 %v1281_v8 }
   0xe   : > { %s1421_s16 = sshll.u32 %s1612_s26, 3  ;;  %1292 = vmatpush3.bf16.msra.mxu0 %v1289_v11  ;;  %1301 = vmatprep.subr.bf16.mxu1 %v1285_v7 }
   0xf   : > { %s1427_s20 = scalar_lea.vmem %s1606_s1, %s1421_s16  ;;  %s1433_s23 = scalar_lea.vmem %s1605_s0, %s1421_s16  ;;  %1294 = vmatprep.subr.bf16.mxu0 %v1293_v14 }
  0x10   : > { %v292_v16 = vld [vmem:[%s1427_s20] sm:$0xff]  ;;  %v293_v19 = vld [vmem:[%s1427_s20 + $0x8] sm:$0xff]  ;;  %v294_v21 = vld [vmem:[%s1427_s20 + $0x10] sm:$0xff]  ;;  %s1470_s30 = scalar_lea.vmem %s1607_s2, %s1421_s16  ;;  %s1552_s10 = scalar_lea.vmem %s1610_s5, %s1421_s16 }
  0x11   : > { %v272_v17 = vld [vmem:[%s1433_s23] sm:$0xff]  ;;  %1189 = vmatprep.mubr.msk.f32.mxu1 %vm313_vm0, %v292_v16  ;;  %v273_v20 = vld [vmem:[%s1433_s23 + $0x8] sm:$0xff]  ;;  %v274_v23 = vld [vmem:[%s1433_s23 + $0x10] sm:$0xff] }
  0x12   : > { %1221 = vmatprep.mubr.msk.f32.mxu0 %vm313_vm0, %v272_v17  ;;  %1190 = vmatmul.mubr.msk.f32.vlgmr.msra.gmra.mrb[0].mxu1 %vm313_vm0, %v293_v19  ;;  %v295_v24 = vld [vmem:[%s1427_s20 + $0x18] sm:$0xff]  ;;  %v296_v26 = vld [vmem:[%s1427_s20 + $0x20] sm:$0xff]  ;;  %v297_v28 = vld [vmem:[%s1427_s20 + $0x28] sm:$0xff] }
  0x13   : > { %1222 = vmatmul.mubr.msk.f32.vlgmr.msra.gmra.mrb[0].mxu0 %vm313_vm0, %v273_v20  ;;  %1303 = vmatpush3.bf16.msra.mxu1 %v1285_v7  ;;  %v275_v25 = vld [vmem:[%s1433_s23 + $0x18] sm:$0xff]  ;;  %v276_v27 = vld [vmem:[%s1433_s23 + $0x20] sm:$0xff]  ;;  %v277_v29 = vld [vmem:[%s1433_s23 + $0x28] sm:$0xff] }
  0x14   : > { %1296 = vmatpush3.bf16.msra.mxu0 %v1293_v14  ;;  %1192 = vmatprep.mubr.msk.f32.mxu1 %vm313_vm0, %v294_v21  ;;  %v298_v30 = vld [vmem:[%s1427_s20 + $0x30] sm:$0xff]  ;;  %v299_v32 = vld [vmem:[%s1427_s20 + $0x38] sm:$0xff]  ;;  %v300_v34 = vld [vmem:[%s1427_s20 + $0x40] sm:$0xff] }
  0x15   : > { %1224 = vmatprep.mubr.msk.f32.mxu0 %vm313_vm0, %v274_v23  ;;  %1298 = vmatprep.subr.bf16.mxu0 %v1297_v22  ;;  %v278_v31 = vld [vmem:[%s1433_s23 + $0x30] sm:$0xff]  ;;  %v279_v33 = vld [vmem:[%s1433_s23 + $0x38] sm:$0xff]  ;;  %v700_v35 = vld [vmem:[%s1470_s30] sm:$0xff] }
  0x16   : > { %1193 = vmatmul.mubr.msk.f32.gmra.mrb[2].mxu1 %vm313_vm0, %v295_v24  ;;  %1302 = vmatprep.subr.bf16.mxu1 %v1289_v11  ;;  %v301_v36 = vld [vmem:[%s1427_s20 + $0x48] sm:$0xff]  ;;  %v302_v38 = vld [vmem:[%s1427_s20 + $0x50] sm:$0xff]  ;;  %v303_v40 = vld [vmem:[%s1427_s20 + $0x58] sm:$0xff] }
  0x17   : > { %1225 = vmatmul.mubr.msk.f32.gmra.mrb[2].mxu0 %vm313_vm0, %v275_v25  ;;  %1195 = vmatprep.mubr.msk.f32.mxu1 %vm313_vm0, %v296_v26  ;;  %v701_v37 = vld [vmem:[%s1470_s30 + $0x8] sm:$0xff]  ;;  %v702_v39 = vld [vmem:[%s1470_s30 + $0x10] sm:$0xff]  ;;  %v703_v41 = vld [vmem:[%s1470_s30 + $0x18] sm:$0xff] }
  0x18   : > { %1227 = vmatprep.mubr.msk.f32.mxu0 %vm313_vm0, %v276_v27  ;;  %1300 = vmatpush3.bf16.msra.mxu0 %v1297_v22  ;;  %v304_v42 = vld [vmem:[%s1427_s20 + $0x60] sm:$0xff]  ;;  %v305_v44 = vld [vmem:[%s1427_s20 + $0x68] sm:$0xff]  ;;  %v306_v46 = vld [vmem:[%s1427_s20 + $0x70] sm:$0xff] }
  0x19   : > { %1304 = vmatpush3.bf16.msra.mxu1 %v1289_v11  ;;  %v704_v43 = vld [vmem:[%s1470_s30 + $0x20] sm:$0xff]  ;;  %v705_v45 = vld [vmem:[%s1470_s30 + $0x28] sm:$0xff]  ;;  %v706_v47 = vld [vmem:[%s1470_s30 + $0x30] sm:$0xff] }
  0x1a   : > { %1196 = vmatmul.mubr.msk.f32.gmra.mrb[4].mxu1 %vm313_vm0, %v297_v28  ;;  %v307_v48 = vld [vmem:[%s1427_s20 + $0x78] sm:$0xff]  ;;  %v280_v50 = vld [vmem:[%s1433_s23 + $0x40] sm:$0xff]  ;;  %v281_v52 = vld [vmem:[%s1433_s23 + $0x48] sm:$0xff] }
  0x1b   : > { %1228 = vmatmul.mubr.msk.f32.gmra.mrb[4].mxu0 %vm313_vm0, %v277_v29  ;;  %1198 = vmatprep.mubr.msk.f32.mxu1 %vm313_vm0, %v298_v30  ;;  %v707_v49 = vld [vmem:[%s1470_s30 + $0x38] sm:$0xff]  ;;  %v708_v51 = vld [vmem:[%s1470_s30 + $0x40] sm:$0xff]  ;;  %v709_v53 = vld [vmem:[%s1470_s30 + $0x48] sm:$0xff] }
  0x1c   : > { %1230 = vmatprep.mubr.msk.f32.mxu0 %vm313_vm0, %v278_v31  ;;  %v282_v54 = vld [vmem:[%s1433_s23 + $0x50] sm:$0xff]  ;;  %v283_v56 = vld [vmem:[%s1433_s23 + $0x58] sm:$0xff]  ;;  %v284_v58 = vld [vmem:[%s1433_s23 + $0x60] sm:$0xff] }
  0x1d   : > { %v710_v55 = vld [vmem:[%s1470_s30 + $0x50] sm:$0xff]  ;;  %v711_v57 = vld [vmem:[%s1470_s30 + $0x58] sm:$0xff]  ;;  %v712_v59 = vld [vmem:[%s1470_s30 + $0x60] sm:$0xff] }
  0x1e   : > { %1199 = vmatmul.mubr.msk.f32.gmra.mrb[6].mxu1 %vm313_vm0, %v299_v32  ;;  %v285_v60 = vld [vmem:[%s1433_s23 + $0x68] sm:$0xff]  ;;  %v286_v62 = vld [vmem:[%s1433_s23 + $0x70] sm:$0xff]  ;;  %v287_v0 = vld [vmem:[%s1433_s23 + $0x78] sm:$0xff] }
  0x1f   : > { %1231 = vmatmul.mubr.msk.f32.gmra.mrb[6].mxu0 %vm313_vm0, %v279_v33  ;;  %1201 = vmatprep.mubr.msk.f32.mxu1 %vm313_vm0, %v300_v34  ;;  %v713_v61 = vld [vmem:[%s1470_s30 + $0x68] sm:$0xff]  ;;  %v714_v63 = vld [vmem:[%s1470_s30 + $0x70] sm:$0xff]  ;;  %v715_v1 = vld [vmem:[%s1470_s30 + $0x78] sm:$0xff] }
  0x20   : > { %1253 = vmatprep.mubr.msk.f32.mxu0 %vm313_vm0, %v700_v35  ;;  %v1546_v11 = vld [vmem:[%s1609_s4] ss:$0 sm:$0xff] }
  0x22   : > { %1202 = vmatmul.mubr.msk.f32.gmra.mrb[8].mxu1 %vm313_vm0, %v301_v36 }
  0x23   : > { %1254 = vmatmul.mubr.msk.f32.vlgmr.msra.gmra.mrb[0].mxu0 %vm313_vm0, %v701_v37  ;;  %1204 = vmatprep.mubr.msk.f32.mxu1 %vm313_vm0, %v302_v38 }
  0x24   : > { %1256 = vmatprep.mubr.msk.f32.mxu0 %vm313_vm0, %v702_v39 }
  0x26   : > { %1205 = vmatmul.mubr.msk.f32.gmra.mrb[10].mxu1 %vm313_vm0, %v303_v40 }
  0x27   : > { %1257 = vmatmul.mubr.msk.f32.gmra.mrb[2].mxu0 %vm313_vm0, %v703_v41  ;;  %1207 = vmatprep.mubr.msk.f32.mxu1 %vm313_vm0, %v304_v42 }
  0x28   : > { %1259 = vmatprep.mubr.msk.f32.mxu0 %vm313_vm0, %v704_v43 }
  0x2a   : > { %1208 = vmatmul.mubr.msk.f32.gmra.mrb[12].mxu1 %vm313_vm0, %v305_v44 }
  0x2b   : > { %1260 = vmatmul.mubr.msk.f32.gmra.mrb[4].mxu0 %vm313_vm0, %v705_v45  ;;  %1210 = vmatprep.mubr.msk.f32.mxu1 %vm313_vm0, %v306_v46 }
  0x2c   : > { %1262 = vmatprep.mubr.msk.f32.mxu0 %vm313_vm0, %v706_v47 }
  0x2e   : > { %1211 = vmatmul.mubr.msk.f32.gmra.mrb[14].mxu1 %vm313_vm0, %v307_v48 }
  0x2f   : > { %1263 = vmatmul.mubr.msk.f32.gmra.mrb[6].mxu0 %vm313_vm0, %v707_v49  ;;  %1233 = vmatprep.mubr.msk.f32.mxu1 %vm313_vm0, %v280_v50 }
  0x30   : > { %1265 = vmatprep.mubr.msk.f32.mxu0 %vm313_vm0, %v708_v51 }
  0x32   : > { %1234 = vmatmul.mubr.msk.f32.vlgmr.msra.gmra.mrb[8].mxu1 %vm313_vm0, %v281_v52 }
  0x33   : > { %1266 = vmatmul.mubr.msk.f32.gmra.mrb[8].mxu0 %vm313_vm0, %v709_v53  ;;  %1236 = vmatprep.mubr.msk.f32.mxu1 %vm313_vm0, %v282_v54 }
  0x34   : > { %1268 = vmatprep.mubr.msk.f32.mxu0 %vm313_vm0, %v710_v55 }
  0x36   : > { %1237 = vmatmul.mubr.msk.f32.gmra.mrb[10].mxu1 %vm313_vm0, %v283_v56 }
  0x37   : > { %1269 = vmatmul.mubr.msk.f32.gmra.mrb[10].mxu0 %vm313_vm0, %v711_v57  ;;  %1239 = vmatprep.mubr.msk.f32.mxu1 %vm313_vm0, %v284_v58 }
  0x38   : > { %1271 = vmatprep.mubr.msk.f32.mxu0 %vm313_vm0, %v712_v59 }
  0x3a   : > { %1240 = vmatmul.mubr.msk.f32.gmra.mrb[12].mxu1 %vm313_vm0, %v285_v60 }
  0x3b   : > { %1272 = vmatmul.mubr.msk.f32.gmra.mrb[12].mxu0 %vm313_vm0, %v713_v61  ;;  %1242 = vmatprep.mubr.msk.f32.mxu1 %vm313_vm0, %v286_v62 }
  0x3c   : > { %1274 = vmatprep.mubr.msk.f32.mxu0 %vm313_vm0, %v714_v63 }
  0x3e   : > { %1243 = vmatmul.mubr.msk.f32.gmra.mrb[14].mxu1 %vm313_vm0, %v287_v0 }
  0x3f   : > { %1275 = vmatmul.mubr.msk.f32.gmra.mrb[14].mxu0 %vm313_vm0, %v715_v1 }
  0xe5   : > { %v1191_v2 = vpop.f32.mrb[0].mxu1 }
  0xe6   : > { %v428_v3 = vpop.f32.mrb[1].mxu1 }
  0xe9   : > { %v1194_v4 = vpop.f32.mrb[2].mxu1 }
  0xea   : > { %v438_v5 = vpop.f32.mrb[3].mxu1 }
  0xed   : > { %v1197_v6 = vpop.f32.mrb[4].mxu1 }
  0xee   : > { %v448_v7 = vpop.f32.mrb[5].mxu1 }
  0xf1   : > { %v1200_v8 = vpop.f32.mrb[6].mxu1 }
  0xf2   : > { %v458_v9 = vpop.f32.mrb[7].mxu1 }
  0xf6   : > { %v1255_v10 = vpop.f32.mrb[0].mxu0 }
  0xf7   : > { %v1305_v12 = vadd.f32 %v1255_v10, %v1191_v2  ;;  %v835_v13 = vpop.f32.mrb[1].mxu0 }
  0xf8   : > { %v1306_v14 = vadd.f32 %v835_v13, %v428_v3 }
  0xf9   : > { %v938_v15 = vadd.f32 %v1305_v12, %v1546_v11 }
  0xfa   : > { %v937_v16 = vadd.f32 %v1306_v14, %v1546_v11  ;;  %v1258_v17 = vpop.f32.mrb[2].mxu0 }
  0xfb   : > { %954 = vst.msk [vmem:[%s1552_s10 + $0x8] sm:$0xff] %vm313_vm0, %v938_v15  ;;  %v1307_v18 = vadd.f32 %v1258_v17, %v1194_v4  ;;  %v845_v19 = vpop.f32.mrb[3].mxu0 }
  0xfc   : > { %953 = vst.msk [vmem:[%s1552_s10] sm:$0xff] %vm313_vm0, %v937_v16  ;;  %v1308_v20 = vadd.f32 %v845_v19, %v438_v5 }
  0xfd   : > { %v940_v21 = vadd.f32 %v1307_v18, %v1546_v11 }
  0xfe   : > { %v939_v22 = vadd.f32 %v1308_v20, %v1546_v11  ;;  %v1261_v23 = vpop.f32.mrb[4].mxu0 }
  0xff   : > { %956 = vst.msk [vmem:[%s1552_s10 + $0x18] sm:$0xff] %vm313_vm0, %v940_v21  ;;  %v1309_v24 = vadd.f32 %v1261_v23, %v1197_v6  ;;  %v855_v25 = vpop.f32.mrb[5].mxu0 }
 0x100   : > { %955 = vst.msk [vmem:[%s1552_s10 + $0x10] sm:$0xff] %vm313_vm0, %v939_v22  ;;  %v1310_v26 = vadd.f32 %v855_v25, %v448_v7 }
 0x101   : > { %v942_v27 = vadd.f32 %v1309_v24, %v1546_v11 }
 0x102   : > { %v941_v28 = vadd.f32 %v1310_v26, %v1546_v11  ;;  %v1264_v29 = vpop.f32.mrb[6].mxu0 }
 0x103   : > { %958 = vst.msk [vmem:[%s1552_s10 + $0x28] sm:$0xff] %vm313_vm0, %v942_v27  ;;  %v1311_v30 = vadd.f32 %v1264_v29, %v1200_v8  ;;  %v865_v31 = vpop.f32.mrb[7].mxu0 }
 0x104   : > { %957 = vst.msk [vmem:[%s1552_s10 + $0x20] sm:$0xff] %vm313_vm0, %v941_v28  ;;  %v1312_v32 = vadd.f32 %v865_v31, %v458_v9 }
 0x105   : > { %v944_v33 = vadd.f32 %v1311_v30, %v1546_v11  ;;  %v1235_v34 = vpop.f32.mrb[8].mxu1 }
 0x106   : > { %v943_v35 = vadd.f32 %v1312_v32, %v1546_v11  ;;  %v1267_v36 = vpop.f32.mrb[8].mxu0  ;;  %v661_v37 = vpop.f32.mrb[9].mxu1 }
 0x107   : > { %960 = vst.msk [vmem:[%s1552_s10 + $0x38] sm:$0xff] %vm313_vm0, %v944_v33  ;;  %v1313_v38 = vadd.f32 %v1267_v36, %v1235_v34  ;;  %v875_v39 = vpop.f32.mrb[9].mxu0 }
 0x108   : > { %959 = vst.msk [vmem:[%s1552_s10 + $0x30] sm:$0xff] %vm313_vm0, %v943_v35  ;;  %v1314_v40 = vadd.f32 %v875_v39, %v661_v37 }
 0x109   : > { %v946_v41 = vadd.f32 %v1313_v38, %v1546_v11  ;;  %v1238_v42 = vpop.f32.mrb[10].mxu1 }
 0x10a   : > { %v945_v43 = vadd.f32 %v1314_v40, %v1546_v11  ;;  %v1270_v44 = vpop.f32.mrb[10].mxu0  ;;  %v671_v45 = vpop.f32.mrb[11].mxu1 }
 0x10b   : > { %962 = vst.msk [vmem:[%s1552_s10 + $0x48] sm:$0xff] %vm313_vm0, %v946_v41  ;;  %v1315_v46 = vadd.f32 %v1270_v44, %v1238_v42  ;;  %v885_v47 = vpop.f32.mrb[11].mxu0 }
 0x10c   : > { %961 = vst.msk [vmem:[%s1552_s10 + $0x40] sm:$0xff] %vm313_vm0, %v945_v43  ;;  %v1316_v48 = vadd.f32 %v885_v47, %v671_v45 }
 0x10d   : > { %v948_v49 = vadd.f32 %v1315_v46, %v1546_v11  ;;  %v1241_v50 = vpop.f32.mrb[12].mxu1 }
 0x10e   : > { %v947_v51 = vadd.f32 %v1316_v48, %v1546_v11  ;;  %v1273_v52 = vpop.f32.mrb[12].mxu0  ;;  %v681_v53 = vpop.f32.mrb[13].mxu1 }
 0x10f   : > { %964 = vst.msk [vmem:[%s1552_s10 + $0x58] sm:$0xff] %vm313_vm0, %v948_v49  ;;  %v1317_v54 = vadd.f32 %v1273_v52, %v1241_v50  ;;  %v895_v55 = vpop.f32.mrb[13].mxu0 }
 0x110   : > { %963 = vst.msk [vmem:[%s1552_s10 + $0x50] sm:$0xff] %vm313_vm0, %v947_v51  ;;  %v1318_v56 = vadd.f32 %v895_v55, %v681_v53 }
 0x111   : > { %v950_v57 = vadd.f32 %v1317_v54, %v1546_v11  ;;  %v1244_v58 = vpop.f32.mrb[14].mxu1 }
 0x112   : > { %v949_v59 = vadd.f32 %v1318_v56, %v1546_v11  ;;  %v1276_v60 = vpop.f32.mrb[14].mxu0  ;;  %v691_v61 = vpop.f32.mrb[15].mxu1 }
 0x113   : > { %966 = vst.msk [vmem:[%s1552_s10 + $0x68] sm:$0xff] %vm313_vm0, %v950_v57  ;;  %v1319_v62 = vadd.f32 %v1276_v60, %v1244_v58  ;;  %v905_v63 = vpop.f32.mrb[15].mxu0 }
 0x114   : > { %965 = vst.msk [vmem:[%s1552_s10 + $0x60] sm:$0xff] %vm313_vm0, %v949_v59  ;;  %v1320_v0 = vadd.f32 %v905_v63, %v691_v61 }
 0x115   : > { %v952_v1 = vadd.f32 %v1319_v62, %v1546_v11 }
 0x116   : > { %v951_v2 = vadd.f32 %v1320_v0, %v1546_v11 }
 0x117   : > { %968 = vst.msk [vmem:[%s1552_s10 + $0x78] sm:$0xff] %vm313_vm0, %v952_v1 }
 0x118   : > { %967 = vst.msk [vmem:[%s1552_s10 + $0x70] sm:$0xff] %vm313_vm0, %v951_v2 }
 0x119 PF: > { %s15_s18 = sadd.s32 1, %s1351_s18  }
 0x11a   : > { %p12_p4 = scmp.ge.s32.totalorder %s15_s18, 4  }
 0x11c   :  { %14 = sbr.rel (!%p12_p4) target bundleno = 1 (0x1), region = 78 }

// kernel: _lambda_.3
= control target key start
LH: loop header
LB: loop body
LE: loop exit
PB: predicated region body
PF: predicated region fallthrough
CT: control target
= control target key end

     0   :  { %s3111_s15 = smov 0   ;;  %s3824_s0 = inlined_call_operand.vmem [shape: f32[16,20,32], index: 0, kind: input, shape index: {}]   ;;  %s3825_s1 = inlined_call_operand.vmem [shape: f32[5,32,96], index: 1, kind: input, shape index: {}]   ;;  %s3826_s2 = inlined_call_operand.vmem [shape: f32[1,96], index: 2, kind: input, shape index: {}]   ;;  %s3827_s3 = inlined_call_operand.vmem [shape: f32[16,16], index: 3, kind: input, shape index: {}]   ;;  %s3828_s4 = inlined_call_operand.vmem [shape: f32[16,16,32], index: 4, kind: output, shape index: {}]  }
   0x1 LB: > { %s2361_s16 = sadd.s32 4294967295, %s3082_s15   ;;  %p2365_p0 = scmp.ge.s32.totalorder %s3082_s15, 1  ;;  %s3082_s15 = sphi %s3111_s15, %s14_s15  }
   0x2   : > { %p164_p1 = scmp.lt.s32.totalorder %s3082_s15, 3 }
   0x4   : > { %p165_p2 = pnand %p2365_p0, %p164_p1 }
   0x5   : > { %v2371_v0 = vld [vmem:[%s3825_s1 + $0x20] sm:$0xff] (!%p165_p2)  ;;  %v2372_v1 = vld [vmem:[%s3825_s1 + $0x28] sm:$0xff] (!%p165_p2)  ;;  %s2366_s23 = sshll.u32 (!%p165_p2), %s2361_s16, 3  ;;  %v2373_v5 = vld [vmem:[%s3825_s1 + $0x30] sm:$0xff] (!%p165_p2)  ;;  %vm258_vm0 = vcmask (!%p165_p2), 1046528   ;;  %vm304_vm1 = vcmask (!%p165_p2), 261120  }
   0x6   : > { %168 = sbr.rel (%p165_p2) target bundleno = 706 (0x2c2), region = 36  ;;  %v2407_v2 = vld [vmem:[%s3825_s1 + $0x40] sm:$0xff] (!%p165_p2)  ;;  %v2865_v3 = vpack.c.bf16 (!%p165_p2), %v2372_v1, %v2371_v0  ;;  %v2408_v4 = vld [vmem:[%s3825_s1 + $0x48] sm:$0xff] (!%p165_p2)  ;;  %v2374_v6 = vld [vmem:[%s3825_s1 + $0x38] sm:$0xff] (!%p165_p2)  ;;  %p193_p3 = scmp.lt.s32.totalorder (!%p165_p2), %s2366_s23, 15  ;;  %vm659_vm2 = vcmask (!%p165_p2), 1045504  }
   0x7   : > { %v2881_v7 = vpack.c.bf16 (!%p165_p2), %v2408_v4, %v2407_v2  ;;  %v2869_v8 = vpack.c.bf16 (!%p165_p2), %v2374_v6, %v2373_v5  ;;  %v2409_v9 = vld [vmem:[%s3825_s1 + $0x50] sm:$0xff] (!%p165_p2)  ;;  %v2410_v10 = vld [vmem:[%s3825_s1 + $0x58] sm:$0xff] (!%p165_p2)  ;;  %v230_v11 = vld [vmem:[%s3825_s1] sm:$0xff] (!%p165_p2)  ;;  %vm898_vm3 = vcmask (!%p165_p2), 1044480   ;;  %vm1137_vm4 = vcmask (!%p165_p2), 1043456   ;;  %s3084_s14 = smov (!%p165_p2), 64  }
   0x8   : > { %2866 = vmatprep.subr.bf16.mxu1 (!%p165_p2), %v2865_v3  ;;  %v2885_v12 = vpack.c.bf16 (!%p165_p2), %v2410_v10, %v2409_v9  ;;  %v231_v13 = vld [vmem:[%s3825_s1 + $0x8] sm:$0xff] (!%p165_p2)  ;;  %v2427_v14 = vld [vmem:[%s3825_s1 + $0x60] sm:$0xff] (!%p165_p2)  ;;  %v232_v16 = vld [vmem:[%s3825_s1 + $0x10] sm:$0xff] (!%p165_p2)  ;;  %s3085_s16 = smov (!%p165_p2), 96   ;;  %vm1673_vm5 = vcmask (!%p165_p2), 130048  }
   0x9   : > { %v2428_v15 = vld [vmem:[%s3825_s1 + $0x68] sm:$0xff] (!%p165_p2)  ;;  %2882 = vmatprep.subr.bf16.mxu0 (!%p165_p2), %v2881_v7  ;;  %2868 = vmatpush3.bf16.msra.mxu1 (!%p165_p2), %v2865_v3  ;;  %v3161_v17 = vpack.c.bf16 (!%p165_p2), %v231_v13, %v230_v11  ;;  %v233_v18 = vld [vmem:[%s3825_s1 + $0x18] sm:$0xff] (!%p165_p2)  ;;  %v2429_v19 = vld [vmem:[%s3825_s1 + $0x70] sm:$0xff] (!%p165_p2) }
   0xa   : > { %2884 = vmatpush3.bf16.msra.mxu0 (!%p165_p2), %v2881_v7  ;;  %2870 = vmatprep.subr.bf16.mxu1 (!%p165_p2), %v2869_v8  ;;  %v2430_v20 = vld [vmem:[%s3825_s1 + $0x78] sm:$0xff] (!%p165_p2)  ;;  %v2889_v21 = vpack.c.bf16 (!%p165_p2), %v2428_v15, %v2427_v14  ;;  %v3186_v25 = vpack.c.bf16 (!%p165_p2), %v233_v18, %v232_v16  ;;  %v2447_v55 = vld [vmem:[%s3825_s1 + $0x80] sm:$0xff] (!%p165_p2)  ;;  %v2448_v56 = vld [vmem:[%s3825_s1 + $0x88] sm:$0xff] (!%p165_p2) }
   0xb   : > { %2886 = vmatprep.subr.bf16.mxu0 (!%p165_p2), %v2885_v12  ;;  %v3188_v26 = vpack.c.bf16 (!%p165_p2), %v2430_v20, %v2429_v19  ;;  %v3270_v7 = vpack.c.bf16 (!%p165_p2), %v2448_v56, %v2447_v55 }
   0xd   : > { %s3830_s23 = smov (!%p193_p3, %s2366_s23), 15  ;;  %2872 = vmatpush3.bf16.msra.mxu1 %v2869_v8 }
   0xe   : > { %s3001_s19 = smul.u32 24, %s3830_s23  ;;  %2888 = vmatpush3.bf16.msra.mxu0 %v2885_v12  ;;  %2874 = vmatprep.subr.bf16.mxu1 %v3161_v17  ;;  %s2516_s21 = sshll.u32 %s3830_s23, 4 }
   0xf   : > { %2890 = vmatprep.subr.bf16.mxu0 %v2889_v21  ;;  %s3787_s25 = scalar_lea.vmem %s3828_s4, %s2516_s21 }
  0x10   : > { %s3175_s29 = scalar_lea.vmem %s3824_s0, %s3001_s19 }
  0x11   : > { %v3178_v22 = vld [vmem:[%s3175_s29] sm:$0xff]  ;;  %v3181_v23 = vld [vmem:[%s3175_s29 + $0x8] sm:$0xff]  ;;  %v3184_v24 = vld [vmem:[%s3175_s29 + $0x10] sm:$0xf] }
  0x12   : > { %v259_v27 = vrot.slane %v3178_v22, 1  ;;  %v260_v28 = vrot.slane %v3181_v23, 1  ;;  %v660_v29 = vrot.slane %v3178_v22, 2  ;;  %v661_v30 = vrot.slane %v3181_v23, 2  ;;  %v3195_v31 = vld [vmem:[%s3175_s29 + $0x18] sm:$0xff]  ;;  %v3198_v32 = vld [vmem:[%s3175_s29 + $0x20] sm:$0xff] }
  0x13   : > { %v262_v33 = vrot.slane %v3184_v24, 1  ;;  %v663_v34 = vrot.slane %v3184_v24, 2  ;;  %v264_v35 = vrot.slane %v3195_v31, 1  ;;  %v265_v36 = vrot.slane %v3198_v32, 1  ;;  %v3206_v37 = vld [vmem:[%s3175_s29 + $0x28] sm:$0xf] }
  0x14   : > { %v261_v38 = vsel %vm258_vm0, %v259_v27, %v260_v28  ;;  %v662_v39 = vsel %vm659_vm2, %v660_v29, %v661_v30  ;;  %v665_v40 = vrot.slane %v3195_v31, 2  ;;  %v666_v41 = vrot.slane %v3198_v32, 2  ;;  %v3213_v42 = vld [vmem:[%s3175_s29 + $0x30] sm:$0xff]  ;;  %v3216_v43 = vld [vmem:[%s3175_s29 + $0x38] sm:$0xff]  ;;  %v3219_v44 = vld [vmem:[%s3175_s29 + $0x40] sm:$0xf] }
  0x15   : > { %2657 = vmatprep.mubr.msk.f32.mxu1 %vm304_vm1, %v261_v38  ;;  %2721 = vmatprep.mubr.msk.f32.mxu0 %vm304_vm1, %v662_v39  ;;  %v263_v45 = vsel %vm258_vm0, %v260_v28, %v262_v33  ;;  %v664_v46 = vsel %vm659_vm2, %v661_v30, %v663_v34  ;;  %v266_v47 = vsel %vm258_vm0, %v264_v35, %v265_v36  ;;  %v267_v48 = vrot.slane %v3206_v37, 1  ;;  %v3228_v49 = vld [vmem:[%s3175_s29 + $0x48] sm:$0xff]  ;;  %v3237_v54 = vld [vmem:[%s3175_s29 + $0x50] sm:$0xff]  ;;  %v3252_v61 = vld [vmem:[%s3175_s29 + $0x58] sm:$0xf] }
  0x16   : > { %2658 = vmatmul.mubr.msk.f32.vlgmr.msra.gmra.mrb[0].mxu1 %vm304_vm1, %v263_v45  ;;  %2722 = vmatmul.mubr.msk.f32.vlgmr.msra.gmra.mrb[0].mxu0 %vm304_vm1, %v664_v46  ;;  %v667_v50 = vsel %vm659_vm2, %v665_v40, %v666_v41  ;;  %v668_v51 = vrot.slane %v3206_v37, 2  ;;  %v269_v52 = vrot.slane %v3213_v42, 1  ;;  %v270_v53 = vrot.slane %v3216_v43, 1  ;;  %v3259_v2 = vld [vmem:[%s3175_s29 + $0x60] sm:$0xff]  ;;  %v3266_v6 = vld [vmem:[%s3175_s29 + $0x68] sm:$0xff]  ;;  %v3291_v20 = vld [vmem:[%s3175_s29 + $0x78] sm:$0xff] }
  0x17   : > { %2660 = vmatprep.mubr.msk.f32.mxu1 %vm304_vm1, %v266_v47  ;;  %2724 = vmatprep.mubr.msk.f32.mxu0 %vm304_vm1, %v667_v50  ;;  %v268_v57 = vsel %vm258_vm0, %v265_v36, %v267_v48  ;;  %v670_v58 = vrot.slane %v3213_v42, 2  ;;  %v671_v59 = vrot.slane %v3216_v43, 2  ;;  %v272_v60 = vrot.slane %v3219_v44, 1  ;;  %v3284_v15 = vld [vmem:[%s3175_s29 + $0x70] sm:$0xf]  ;;  %v3320_v40 = vld [vmem:[%s3175_s29 + $0x98] sm:$0xff] }
  0x18   : > { %v669_v62 = vsel %vm659_vm2, %v666_v41, %v668_v51  ;;  %v271_v63 = vsel %vm258_vm0, %v269_v52, %v270_v53  ;;  %v673_v0 = vrot.slane %v3219_v44, 2  ;;  %v274_v1 = vrot.slane %v3228_v49, 1  ;;  %2876 = vmatpush3.bf16.msra.mxu1 %v3161_v17  ;;  %2892 = vmatpush3.bf16.msra.mxu0 %v2889_v21  ;;  %v3294_v21 = vld [vmem:[%s3175_s29 + $0x80] sm:$0xff]  ;;  %v3314_v38 = vld [vmem:[%s3175_s29 + $0x88] sm:$0xf]  ;;  %v3317_v39 = vld [vmem:[%s3175_s29 + $0x90] sm:$0xff] }
  0x19   : > { %v672_v3 = vsel %vm659_vm2, %v670_v58, %v671_v59  ;;  %v275_v4 = vrot.slane %v3237_v54, 1  ;;  %v675_v5 = vrot.slane %v3228_v49, 2  ;;  %2878 = vmatprep.subr.bf16.mxu1 %v3186_v25  ;;  %2894 = vmatprep.subr.bf16.mxu0 %v3188_v26  ;;  %v676_v8 = vrot.slane %v3237_v54, 2  ;;  %v3333_v51 = vld [vmem:[%s3175_s29 + $0xa0] sm:$0xf]  ;;  %v3343_v58 = vld [vmem:[%s3175_s29 + $0xb0] sm:$0xff] }
  0x1a   : > { %2661 = vmatmul.mubr.msk.f32.gmra.mrb[2].mxu1 %vm304_vm1, %v268_v57  ;;  %2725 = vmatmul.mubr.msk.f32.gmra.mrb[2].mxu0 %vm304_vm1, %v669_v62  ;;  %v277_v9 = vrot.slane %v3252_v61, 1  ;;  %v678_v10 = vrot.slane %v3252_v61, 2  ;;  %v273_v11 = vsel %vm258_vm0, %v270_v53, %v272_v60  ;;  %v674_v12 = vsel %vm659_vm2, %v671_v59, %v673_v0  ;;  %v3340_v57 = vld [vmem:[%s3175_s29 + $0xa8] sm:$0xff] }
  0x1b   : > { %2663 = vmatprep.mubr.msk.f32.mxu1 %vm304_vm1, %v271_v63  ;;  %2727 = vmatprep.mubr.msk.f32.mxu0 %vm304_vm1, %v672_v3  ;;  %v276_v13 = vsel %vm258_vm0, %v274_v1, %v275_v4  ;;  %v279_v14 = vrot.slane %v3259_v2, 1  ;;  %v677_v16 = vsel %vm659_vm2, %v675_v5, %v676_v8  ;;  %v280_v17 = vrot.slane %v3266_v6, 1  ;;  %v3356_v3 = vld [vmem:[%s3175_s29 + $0xb8] sm:$0xf] }
  0x1c   : > { %v680_v18 = vrot.slane %v3259_v2, 2  ;;  %v681_v19 = vrot.slane %v3266_v6, 2  ;;  %2880 = vmatpush3.bf16.msra.mxu1 %v3186_v25  ;;  %2896 = vmatpush3.bf16.msra.mxu0 %v3188_v26  ;;  %v278_v27 = vsel %vm258_vm0, %v275_v4, %v277_v9  ;;  %v679_v28 = vsel %vm659_vm2, %v676_v8, %v678_v10 }
  0x1d   : > { %2898 = vmatprep.subr.bf16.mxu0 %v3270_v7  ;;  %v282_v29 = vrot.slane %v3284_v15, 1  ;;  %v683_v30 = vrot.slane %v3284_v15, 2  ;;  %v284_v25 = vrot.slane %v3291_v20, 1  ;;  %v285_v26 = vrot.slane %v3294_v21, 1 }
  0x1e   : > { %2664 = vmatmul.mubr.msk.f32.gmra.mrb[4].mxu1 %vm304_vm1, %v273_v11  ;;  %2728 = vmatmul.mubr.msk.f32.gmra.mrb[4].mxu0 %vm304_vm1, %v674_v12  ;;  %v685_v33 = vrot.slane %v3291_v20, 2  ;;  %v686_v34 = vrot.slane %v3294_v21, 2  ;;  %v281_v35 = vsel %vm258_vm0, %v279_v14, %v280_v17  ;;  %v682_v36 = vsel %vm659_vm2, %v680_v18, %v681_v19 }
  0x1f   : > { %2666 = vmatprep.mubr.msk.f32.mxu1 %vm304_vm1, %v276_v13  ;;  %2730 = vmatprep.mubr.msk.f32.mxu0 %vm304_vm1, %v677_v16  ;;  %v283_v41 = vsel %vm258_vm0, %v280_v17, %v282_v29  ;;  %v684_v45 = vsel %vm659_vm2, %v681_v19, %v683_v30  ;;  %v286_v46 = vsel %vm258_vm0, %v284_v25, %v285_v26  ;;  %v287_v48 = vrot.slane %v3314_v38, 1  ;;  %v2449_v19 = vld [vmem:[%s3825_s1 + $0x90] sm:$0xff] }
  0x20   : > { %v687_v47 = vsel %vm659_vm2, %v685_v33, %v686_v34  ;;  %v688_v50 = vrot.slane %v3314_v38, 2  ;;  %v289_v52 = vrot.slane %v3317_v39, 1  ;;  %v290_v53 = vrot.slane %v3320_v40, 1 }
  0x21   : > { %v690_v55 = vrot.slane %v3317_v39, 2  ;;  %v691_v56 = vrot.slane %v3320_v40, 2  ;;  %v292_v59 = vrot.slane %v3333_v51, 1  ;;  %v693_v60 = vrot.slane %v3333_v51, 2 }
  0x22   : > { %2667 = vmatmul.mubr.msk.f32.gmra.mrb[6].mxu1 %vm304_vm1, %v278_v27  ;;  %2731 = vmatmul.mubr.msk.f32.gmra.mrb[6].mxu0 %vm304_vm1, %v679_v28  ;;  %v288_v62 = vsel %vm258_vm0, %v285_v26, %v287_v48  ;;  %v689_v63 = vsel %vm659_vm2, %v686_v34, %v688_v50  ;;  %v294_v0 = vrot.slane %v3340_v57, 1  ;;  %v295_v1 = vrot.slane %v3343_v58, 1  ;;  %v2450_v27 = vld [vmem:[%s3825_s1 + $0x98] sm:$0xff] }
  0x23   : > { %2669 = vmatprep.mubr.msk.f32.mxu1 %vm304_vm1, %v281_v35  ;;  %2733 = vmatprep.mubr.msk.f32.mxu0 %vm304_vm1, %v682_v36  ;;  %v291_v4 = vsel %vm258_vm0, %v289_v52, %v290_v53  ;;  %v692_v5 = vsel %vm659_vm2, %v690_v55, %v691_v56  ;;  %v695_v8 = vrot.slane %v3340_v57, 2  ;;  %v696_v9 = vrot.slane %v3343_v58, 2 }
  0x24   : > { %v293_v10 = vsel %vm258_vm0, %v290_v53, %v292_v59  ;;  %v694_v11 = vsel %vm659_vm2, %v691_v56, %v693_v60  ;;  %v297_v12 = vrot.slane %v3356_v3, 1  ;;  %v698_v13 = vrot.slane %v3356_v3, 2 }
  0x25   : > { %v296_v14 = vsel %vm258_vm0, %v294_v0, %v295_v1  ;;  %v899_v16 = vrot.slane %v3178_v22, 3  ;;  %v900_v17 = vrot.slane %v3181_v23, 3  ;;  %v902_v18 = vrot.slane %v3184_v24, 3 }
  0x26   : > { %2670 = vmatmul.mubr.msk.f32.gmra.mrb[8].mxu1 %vm304_vm1, %v283_v41  ;;  %2734 = vmatmul.mubr.msk.f32.gmra.mrb[8].mxu0 %vm304_vm1, %v684_v45  ;;  %v697_v28 = vsel %vm659_vm2, %v695_v8, %v696_v9  ;;  %v904_v29 = vrot.slane %v3195_v31, 3  ;;  %v905_v30 = vrot.slane %v3198_v32, 3  ;;  %v907_v25 = vrot.slane %v3206_v37, 3 }
  0x27   : > { %2672 = vmatprep.mubr.msk.f32.mxu1 %vm304_vm1, %v286_v46  ;;  %2736 = vmatprep.mubr.msk.f32.mxu0 %vm304_vm1, %v687_v47  ;;  %v298_v26 = vsel %vm258_vm0, %v295_v1, %v297_v12  ;;  %v909_v33 = vrot.slane %v3213_v42, 3  ;;  %v910_v34 = vrot.slane %v3216_v43, 3  ;;  %v3389_v35 = vpack.c.bf16 %v2450_v27, %v2449_v19 }
  0x28   : > { %v699_v36 = vsel %vm659_vm2, %v696_v9, %v698_v13  ;;  %v901_v41 = vsel %vm898_vm3, %v899_v16, %v900_v17  ;;  %v903_v45 = vsel %vm898_vm3, %v900_v17, %v902_v18  ;;  %v912_v46 = vrot.slane %v3219_v44, 3 }
  0x29   : > { %v906_v47 = vsel %vm898_vm3, %v904_v29, %v905_v30  ;;  %v908_v48 = vsel %vm898_vm3, %v905_v30, %v907_v25  ;;  %v914_v50 = vrot.slane %v3228_v49, 3  ;;  %v1143_v52 = vrot.slane %v3195_v31, 4 }
  0x2a   : > { %2673 = vmatmul.mubr.msk.f32.gmra.mrb[10].mxu1 %vm304_vm1, %v288_v62  ;;  %2737 = vmatmul.mubr.msk.f32.gmra.mrb[10].mxu0 %vm304_vm1, %v689_v63  ;;  %v915_v53 = vrot.slane %v3237_v54, 3  ;;  %v1144_v55 = vrot.slane %v3198_v32, 4  ;;  %v1146_v56 = vrot.slane %v3206_v37, 4  ;;  %v1148_v59 = vrot.slane %v3213_v42, 4 }
  0x2b   : > { %2675 = vmatprep.mubr.msk.f32.mxu1 %vm304_vm1, %v291_v4  ;;  %2739 = vmatprep.mubr.msk.f32.mxu0 %vm304_vm1, %v692_v5  ;;  %v911_v60 = vsel %vm898_vm3, %v909_v33, %v910_v34  ;;  %v1149_v62 = vrot.slane %v3216_v43, 4  ;;  %v1151_v63 = vrot.slane %v3219_v44, 4  ;;  %v1153_v0 = vrot.slane %v3228_v49, 4 }
  0x2c   : > { %v3417_v37 = vsel %vm1137_vm4, %v1143_v52, %v1144_v55  ;;  %v3420_v1 = vsel %vm1137_vm4, %v1144_v55, %v1146_v56  ;;  %v1154_v4 = vrot.slane %v3237_v54, 4  ;;  %v1156_v5 = vrot.slane %v3252_v61, 4 }
  0x2d   : > { %v3425_v8 = vsel %vm1137_vm4, %v1148_v59, %v1149_v62  ;;  %v3428_v44 = vsel %vm1137_vm4, %v1149_v62, %v1151_v63  ;;  %v1158_v9 = vrot.slane %v3259_v2, 4  ;;  %v1161_v13 = vrot.slane %v3284_v15, 4 }
  0x2e   : > { %2676 = vmatmul.mubr.msk.f32.gmra.mrb[12].mxu1 %vm304_vm1, %v293_v10  ;;  %2740 = vmatmul.mubr.msk.f32.gmra.mrb[12].mxu0 %vm304_vm1, %v694_v11  ;;  %v1159_v10 = vrot.slane %v3266_v6, 4  ;;  %v3433_v11 = vsel %vm1137_vm4, %v1153_v0, %v1154_v4  ;;  %v3436_v12 = vsel %vm1137_vm4, %v1154_v4, %v1156_v5  ;;  %v1164_v17 = vrot.slane %v3294_v21, 4 }
  0x2f   : > { %2678 = vmatprep.mubr.msk.f32.mxu1 %vm304_vm1, %v296_v14  ;;  %2742 = vmatprep.mubr.msk.f32.mxu0 %vm304_vm1, %v697_v28  ;;  %v1163_v14 = vrot.slane %v3291_v20, 4  ;;  %v1166_v18 = vrot.slane %v3314_v38, 4  ;;  %v1168_v19 = vrot.slane %v3317_v39, 4  ;;  %v1169_v28 = vrot.slane %v3320_v40, 4 }
  0x30   : > { %v3444_v16 = vsel %vm1137_vm4, %v1158_v9, %v1159_v10  ;;  %v3453_v27 = vsel %vm1137_vm4, %v1159_v10, %v1161_v13  ;;  %v1171_v29 = vrot.slane %v3333_v51, 4  ;;  %v1173_v30 = vrot.slane %v3340_v57, 4  ;;  %v3596_v13 = vld [vmem:[%s3826_s2] ss:$0 sm:$0xff] }
  0x31   : > { %v3460_v25 = vsel %vm1137_vm4, %v1163_v14, %v1164_v17  ;;  %v1176_v33 = vrot.slane %v3356_v3, 4  ;;  %v917_v52 = vrot.slane %v3252_v61, 3  ;;  %v920_v55 = vrot.slane %v3266_v6, 3 }
  0x32   : > { %2679 = vmatmul.mubr.msk.f32.gmra.mrb[14].mxu1 %vm304_vm1, %v298_v26  ;;  %2743 = vmatmul.mubr.msk.f32.gmra.mrb[14].mxu0 %vm304_vm1, %v699_v36  ;;  %v3463_v26 = vsel %vm1137_vm4, %v1164_v17, %v1166_v18  ;;  %v3469_v36 = vsel %vm1137_vm4, %v1168_v19, %v1169_v28  ;;  %v922_v61 = vrot.slane %v3284_v15, 3  ;;  %v934_v56 = vrot.slane %v3340_v57, 3 }
  0x33   : > { %2689 = vmatprep.mubr.msk.f32.mxu1 %vm304_vm1, %v3178_v22  ;;  %2753 = vmatprep.mubr.msk.f32.mxu0 %vm304_vm1, %v901_v41  ;;  %v3472_v41 = vsel %vm1137_vm4, %v1169_v28, %v1171_v29  ;;  %v935_v59 = vrot.slane %v3343_v58, 3  ;;  %v1139_v62 = vrot.slane %v3181_v23, 4 }
  0x36   : > { %2690 = vmatmul.mubr.msk.f32.vlgmr.msra.gmra.mrb[0].mxu1 %vm304_vm1, %v3181_v23  ;;  %2754 = vmatmul.mubr.msk.f32.vlgmr.msra.gmra.mrb[0].mxu0 %vm304_vm1, %v903_v45 }
  0x37   : > { %2692 = vmatprep.mubr.msk.f32.mxu1 %vm304_vm1, %v3195_v31  ;;  %2756 = vmatprep.mubr.msk.f32.mxu0 %vm304_vm1, %v906_v47  ;;  %v1174_v31 = vrot.slane %v3343_v58, 4  ;;  %v913_v47 = vsel %vm898_vm3, %v910_v34, %v912_v46  ;;  %v924_v46 = vrot.slane %v3291_v20, 3 }
  0x38   : > { %2900 = vmatpush3.bf16.msra.mxu0 %v3270_v7 }
  0x39   : > { %2902 = vmatprep.subr.bf16.mxu0 %v3389_v35  ;;  %v3478_v7 = vsel %vm1137_vm4, %v1173_v30, %v1174_v31  ;;  %v3481_v45 = vsel %vm1137_vm4, %v1174_v31, %v1176_v33 }
  0x3a   : > { %2693 = vmatmul.mubr.msk.f32.gmra.mrb[2].mxu1 %vm304_vm1, %v3198_v32  ;;  %2757 = vmatmul.mubr.msk.f32.gmra.mrb[2].mxu0 %vm304_vm1, %v908_v48  ;;  %v916_v32 = vsel %vm898_vm3, %v914_v50, %v915_v53  ;;  %v919_v48 = vrot.slane %v3259_v2, 3  ;;  %v929_v50 = vrot.slane %v3317_v39, 3 }
  0x3b   : > { %2695 = vmatprep.mubr.msk.f32.mxu1 %vm304_vm1, %v3213_v42  ;;  %2759 = vmatprep.mubr.msk.f32.mxu0 %vm304_vm1, %v911_v60  ;;  %v918_v42 = vsel %vm898_vm3, %v915_v53, %v917_v52  ;;  %v930_v53 = vrot.slane %v3320_v40, 3  ;;  %v1138_v60 = vrot.slane %v3178_v22, 4 }
  0x3c   : > { %2904 = vmatpush3.bf16.msra.mxu0 %v3389_v35  ;;  %v921_v34 = vsel %vm898_vm3, %v919_v48, %v920_v55  ;;  %v925_v35 = vrot.slane %v3294_v21, 3 }
  0x3e   : > { %2696 = vmatmul.mubr.msk.f32.gmra.mrb[4].mxu1 %vm304_vm1, %v3216_v43  ;;  %2760 = vmatmul.mubr.msk.f32.gmra.mrb[4].mxu0 %vm304_vm1, %v913_v47  ;;  %v923_v43 = vsel %vm898_vm3, %v920_v55, %v922_v61  ;;  %v926_v15 = vsel %vm898_vm3, %v924_v46, %v925_v35 }
  0x3f   : > { %2698 = vmatprep.mubr.msk.f32.mxu1 %vm304_vm1, %v3228_v49  ;;  %2762 = vmatprep.mubr.msk.f32.mxu0 %vm304_vm1, %v916_v32  ;;  %v927_v49 = vrot.slane %v3314_v38, 3  ;;  %v931_v38 = vsel %vm898_vm3, %v929_v50, %v930_v53 }
  0x42   : > { %2699 = vmatmul.mubr.msk.f32.gmra.mrb[6].mxu1 %vm304_vm1, %v3237_v54  ;;  %2763 = vmatmul.mubr.msk.f32.gmra.mrb[6].mxu0 %vm304_vm1, %v918_v42  ;;  %v928_v54 = vsel %vm898_vm3, %v925_v35, %v927_v49 }
  0x43   : > { %2701 = vmatprep.mubr.msk.f32.mxu1 %vm304_vm1, %v3259_v2  ;;  %2765 = vmatprep.mubr.msk.f32.mxu0 %vm304_vm1, %v921_v34  ;;  %v932_v2 = vrot.slane %v3333_v51, 3  ;;  %v936_v51 = vsel %vm898_vm3, %v934_v56, %v935_v59 }
  0x46   : > { %2702 = vmatmul.mubr.msk.f32.gmra.mrb[8].mxu1 %vm304_vm1, %v3266_v6  ;;  %2766 = vmatmul.mubr.msk.f32.gmra.mrb[8].mxu0 %vm304_vm1, %v923_v43  ;;  %v933_v6 = vsel %vm898_vm3, %v930_v53, %v932_v2 }
  0x47   : > { %2704 = vmatprep.mubr.msk.f32.mxu1 %vm304_vm1, %v3291_v20  ;;  %2768 = vmatprep.mubr.msk.f32.mxu0 %vm304_vm1, %v926_v15  ;;  %v937_v20 = vrot.slane %v3356_v3, 3  ;;  %v1140_v3 = vsel %vm1137_vm4, %v1138_v60, %v1139_v62 }
  0x4a   : > { %2705 = vmatmul.mubr.msk.f32.gmra.mrb[10].mxu1 %vm304_vm1, %v3294_v21  ;;  %2769 = vmatmul.mubr.msk.f32.gmra.mrb[10].mxu0 %vm304_vm1, %v928_v54  ;;  %v938_v21 = vsel %vm898_vm3, %v935_v59, %v937_v20 }
  0x4b   : > { %2707 = vmatprep.mubr.msk.f32.mxu1 %vm304_vm1, %v3317_v39  ;;  %2771 = vmatprep.mubr.msk.f32.mxu0 %vm304_vm1, %v931_v38  ;;  %v1141_v39 = vrot.slane %v3184_v24, 4 }
  0x4d   : > { %v1142_v22 = vsel %vm1137_vm4, %v1139_v62, %v1141_v39 }
  0x4e   : > { %2708 = vmatmul.mubr.msk.f32.gmra.mrb[12].mxu1 %vm304_vm1, %v3320_v40  ;;  %2772 = vmatmul.mubr.msk.f32.gmra.mrb[12].mxu0 %vm304_vm1, %v933_v6 }
  0x4f   : > { %2710 = vmatprep.mubr.msk.f32.mxu1 %vm304_vm1, %v3340_v57  ;;  %2774 = vmatprep.mubr.msk.f32.mxu0 %vm304_vm1, %v936_v51 }
  0x52   : > { %2711 = vmatmul.mubr.msk.f32.gmra.mrb[14].mxu1 %vm304_vm1, %v3343_v58  ;;  %2775 = vmatmul.mubr.msk.f32.gmra.mrb[14].mxu0 %vm304_vm1, %v938_v21 }
  0x53   : > { %2785 = vmatprep.mubr.msk.f32.mxu0 %vm304_vm1, %v1140_v3 }
  0x56   : > { %2786 = vmatmul.mubr.msk.f32.vlgmr.msra.gmra.mrb[0].mxu0 %vm304_vm1, %v1142_v22 }
  0x57   : > { %2788 = vmatprep.mubr.msk.f32.mxu0 %vm304_vm1, %v3417_v37 }
  0x5a   : > { %2789 = vmatmul.mubr.msk.f32.gmra.mrb[2].mxu0 %vm304_vm1, %v3420_v1 }
  0x5b   : > { %2791 = vmatprep.mubr.msk.f32.mxu0 %vm304_vm1, %v3425_v8 }
  0x5e   : > { %2792 = vmatmul.mubr.msk.f32.gmra.mrb[4].mxu0 %vm304_vm1, %v3428_v44 }
  0x5f   : > { %2794 = vmatprep.mubr.msk.f32.mxu0 %vm304_vm1, %v3433_v11 }
  0x62   : > { %2795 = vmatmul.mubr.msk.f32.gmra.mrb[6].mxu0 %vm304_vm1, %v3436_v12 }
  0x63   : > { %2797 = vmatprep.mubr.msk.f32.mxu0 %vm304_vm1, %v3444_v16 }
  0x66   : > { %2798 = vmatmul.mubr.msk.f32.gmra.mrb[8].mxu0 %vm304_vm1, %v3453_v27 }
  0x67   : > { %2800 = vmatprep.mubr.msk.f32.mxu0 %vm304_vm1, %v3460_v25 }
  0x6a   : > { %2801 = vmatmul.mubr.msk.f32.gmra.mrb[10].mxu0 %vm304_vm1, %v3463_v26 }
  0x6b   : > { %2803 = vmatprep.mubr.msk.f32.mxu0 %vm304_vm1, %v3469_v36 }
  0x6e   : > { %2804 = vmatmul.mubr.msk.f32.gmra.mrb[12].mxu0 %vm304_vm1, %v3472_v41 }
  0x6f   : > { %2806 = vmatprep.mubr.msk.f32.mxu0 %vm304_vm1, %v3478_v7 }
  0x72   : > { %2807 = vmatmul.mubr.msk.f32.gmra.mrb[14].mxu0 %vm304_vm1, %v3481_v45 }
 0x109   : > { %v2691_v23 = vpop.f32.mrb[0].mxu1 }
 0x10a   : > { %v580_v24 = vpop.f32.mrb[1].mxu1 }
 0x10d   : > { %v2694_v40 = vpop.f32.mrb[2].mxu1 }
 0x10e   : > { %v590_v57 = vpop.f32.mrb[3].mxu1 }
 0x111   : > { %v2697_v58 = vpop.f32.mrb[4].mxu1 }
 0x112   : > { %v600_v63 = vpop.f32.mrb[5].mxu1 }
 0x115   : > { %v2700_v0 = vpop.f32.mrb[6].mxu1 }
 0x116   : > { %v610_v37 = vpop.f32.mrb[7].mxu1 }
 0x119   : > { %v2703_v1 = vpop.f32.mrb[8].mxu1 }
 0x11a   : > { %v620_v4 = vpop.f32.mrb[9].mxu1 }
 0x11d   : > { %v3581_v5 = vpop.f32.mrb[10].mxu1 }
 0x11e   : > { %v3583_v8 = vpop.f32.mrb[11].mxu1 }
 0x121   : > { %v3585_v44 = vpop.f32.mrb[12].mxu1 }
 0x122   : > { %v3587_v9 = vpop.f32.mrb[13].mxu1 }
 0x125   : > { %v3589_v10 = vpop.f32.mrb[14].mxu1 }
 0x126   : > { %v3591_v11 = vpop.f32.mrb[15].mxu1 }
 0x129   : > { %v2787_v12 = vpop.f32.mrb[0].mxu0 }
 0x12a   : > { %v2937_v14 = vadd.f32 %v2787_v12, %v2691_v23  ;;  %v1281_v16 = vpop.f32.mrb[1].mxu0 }
 0x12b   : > { %v2938_v17 = vadd.f32 %v1281_v16, %v580_v24 }
 0x12c   : > { %v3599_v18 = vadd.f32 %v2937_v14, %v3596_v13 }
 0x12d   : > { %v3602_v19 = vadd.f32 %v2938_v17, %v3596_v13  ;;  %v2790_v27 = vpop.f32.mrb[2].mxu0 }
 0x12e   : > { %v2469_v28 = vmul.f32 -1.442695, %v3599_v18  ;;  %v2939_v29 = vadd.f32 %v2790_v27, %v2694_v40  ;;  %v1291_v30 = vpop.f32.mrb[3].mxu0  ;;  %1593 = vrot.lane.b32.xlu1 %v3599_v18, %s3084_s14 }
 0x12f   : > { %v2468_v25 = vmul.f32 -1.442695, %v3602_v19  ;;  %v2940_v26 = vadd.f32 %v1291_v30, %v590_v57 }
 0x130   : > { %3012 = vpow2.f32 %v2469_v28  ;;  %v3609_v31 = vadd.f32 %v2939_v29, %v3596_v13 }
 0x131   : > { %3014 = vpow2.f32 %v2468_v25  ;;  %v3612_v33 = vadd.f32 %v2940_v26, %v3596_v13  ;;  %v2793_v36 = vpop.f32.mrb[4].mxu0 }
 0x132   : > { %v2471_v41 = vmul.f32 -1.442695, %v3609_v31  ;;  %v2941_v7 = vadd.f32 %v2793_v36, %v2697_v58  ;;  %v1301_v45 = vpop.f32.mrb[5].mxu0  ;;  %1591 = vrot.lane.b32.xlu1 %v3602_v19, %s3084_s14 }
 0x133   : > { %v2470_v47 = vmul.f32 -1.442695, %v3612_v33  ;;  %v2942_v52 = vadd.f32 %v1301_v45, %v600_v63  ;;  %1595 = vrot.lane.b32.xlu0 %v3612_v33, %s3084_s14 }
 0x134   : > { %3016 = vpow2.f32 %v2471_v41  ;;  %v3621_v32 = vadd.f32 %v2941_v7, %v3596_v13 }
 0x135   : > { %3018 = vpow2.f32 %v2470_v47  ;;  %v3624_v48 = vadd.f32 %v2942_v52, %v3596_v13  ;;  %v2796_v55 = vpop.f32.mrb[6].mxu0 }
 0x136   : > { %v2473_v42 = vmul.f32 -1.442695, %v3621_v32  ;;  %v2943_v61 = vadd.f32 %v2796_v55, %v2700_v0  ;;  %v1311_v34 = vpop.f32.mrb[7].mxu0  ;;  %1597 = vrot.lane.b32.xlu1 %v3609_v31, %s3084_s14 }
 0x137   : > { %v2472_v46 = vmul.f32 -1.442695, %v3624_v48  ;;  %v2944_v35 = vadd.f32 %v1311_v34, %v610_v37  ;;  %1599 = vrot.lane.b32.xlu0 %v3624_v48, %s3084_s14 }
 0x138   : > { %3020 = vpow2.f32 %v2473_v42  ;;  %v3633_v43 = vadd.f32 %v2943_v61, %v3596_v13 }
 0x139   : > { %v3636_v49 = vadd.f32 %v2944_v35, %v3596_v13  ;;  %v2799_v15 = vpop.f32.mrb[8].mxu0  ;;  %3022 = vpow2.f32 %v2472_v46 }
 0x13a   : > { %v3013_v50 = vpop.eup %3012  ;;  %v2475_v53 = vmul.f32 -1.442695, %v3633_v43  ;;  %v2945_v54 = vadd.f32 %v2799_v15, %v2703_v1  ;;  %v1321_v2 = vpop.f32.mrb[9].mxu0  ;;  %1601 = vrot.lane.b32.xlu1 %v3621_v32, %s3084_s14 }
 0x13b   : > { %v3015_v38 = vpop.eup %3014  ;;  %v1448_v56 = vadd.f32 1.0, %v3013_v50  ;;  %v2474_v59 = vmul.f32 -1.442695, %v3636_v49  ;;  %v2946_v6 = vadd.f32 %v1321_v2, %v620_v4  ;;  %1603 = vrot.lane.b32.xlu0 %v3636_v49, %s3084_s14 }
 0x13c   : > { %3024 = vpow2.f32 %v2475_v53  ;;  %v3645_v20 = vadd.f32 %v2945_v54, %v3596_v13  ;;  %v1447_v51 = vadd.f32 1.0, %v3015_v38  ;;  %v3702_v54 = vld [vmem:[%s3827_s3] sm:$0xff] }
 0x13d   : > { %v3648_v60 = vadd.f32 %v2946_v6, %v3596_v13  ;;  %v2802_v62 = vpop.f32.mrb[10].mxu0  ;;  %3026 = vrcp.f32 %v1448_v56  ;;  %2813 = vmatprep.mubr.msk.f32.mxu1 %vm1673_vm5, %v3702_v54 }
 0x13e   : > { %v3017_v21 = vpop.eup %3016  ;;  %v2477_v39 = vmul.f32 -1.442695, %v3645_v20  ;;  %v2947_v3 = vadd.f32 %v2802_v62, %v3581_v5  ;;  %v1331_v22 = vpop.f32.mrb[11].mxu0  ;;  %1605 = vrot.lane.b32.xlu1 %v3633_v43, %s3084_s14  ;;  %3028 = vpow2.f32 %v2474_v59 }
 0x13f   : > { %v3019_v23 = vpop.eup %3018  ;;  %v1450_v24 = vadd.f32 1.0, %v3017_v21  ;;  %v2476_v40 = vmul.f32 -1.442695, %v3648_v60  ;;  %v2948_v57 = vadd.f32 %v1331_v22, %v3583_v8  ;;  %1607 = vrot.lane.b32.xlu0 %v3648_v60, %s3084_s14 }
 0x140   : > { %3030 = vpow2.f32 %v2477_v39  ;;  %v3659_v58 = vadd.f32 %v2947_v3, %v3596_v13  ;;  %v1449_v63 = vadd.f32 1.0, %v3019_v23 }
 0x141   : > { %3032 = vrcp.f32 %v1447_v51  ;;  %v3662_v0 = vadd.f32 %v2948_v57, %v3596_v13  ;;  %v2805_v37 = vpop.f32.mrb[12].mxu0 }
 0x142   : > { %v3021_v1 = vpop.eup %3020  ;;  %3034 = vrcp.f32 %v1450_v24  ;;  %v2479_v4 = vmul.f32 -1.442695, %v3659_v58  ;;  %v2949_v5 = vadd.f32 %v2805_v37, %v3585_v44  ;;  %v1341_v8 = vpop.f32.mrb[13].mxu0  ;;  %1609 = vrot.lane.b32.xlu1 %v3645_v20, %s3084_s14 }
 0x143   : > { %v1452_v12 = vadd.f32 1.0, %v3021_v1  ;;  %3036 = vpow2.f32 %v2476_v40  ;;  %v2478_v14 = vmul.f32 -1.442695, %v3662_v0  ;;  %v2950_v16 = vadd.f32 %v1341_v8, %v3587_v9  ;;  %1611 = vrot.lane.b32.xlu0 %v3662_v0, %s3084_s14  ;;  %v3023_v27 = vpop.eup %3022 }
 0x144   : > { %3038 = vpow2.f32 %v2479_v4  ;;  %v3673_v17 = vadd.f32 %v2949_v5, %v3596_v13  ;;  %v1451_v45 = vadd.f32 1.0, %v3023_v27 }
 0x145   : > { %3040 = vrcp.f32 %v1449_v63  ;;  %v3676_v44 = vadd.f32 %v2950_v16, %v3596_v13  ;;  %v2808_v28 = vpop.f32.mrb[14].mxu0 }
 0x146   : > { %v3025_v29 = vpop.eup %3024  ;;  %3042 = vrcp.f32 %v1452_v12  ;;  %v2481_v30 = vmul.f32 -1.442695, %v3673_v17  ;;  %v2951_v25 = vadd.f32 %v2808_v28, %v3589_v10  ;;  %v1351_v9 = vpop.f32.mrb[15].mxu0  ;;  %1613 = vrot.lane.b32.xlu1 %v3659_v58, %s3084_s14 }
 0x147   : > { %v1454_v26 = vadd.f32 1.0, %v3025_v29  ;;  %3044 = vpow2.f32 %v2478_v14  ;;  %v2480_v36 = vmul.f32 -1.442695, %v3676_v44  ;;  %v2952_v41 = vadd.f32 %v1351_v9, %v3591_v11  ;;  %1615 = vrot.lane.b32.xlu0 %v3676_v44, %s3084_s14  ;;  %v3027_v7 = vpop.eup %3026 }
 0x148   : > { %3046 = vpow2.f32 %v2481_v30  ;;  %v3687_v47 = vadd.f32 %v2951_v25, %v3596_v13  ;;  %v3029_v10 = vpop.eup %3028 }
 0x149   : > { %v3690_v52 = vadd.f32 %v2952_v41, %v3596_v13  ;;  %3048 = vrcp.f32 %v1454_v26  ;;  %v1453_v35 = vadd.f32 1.0, %v3029_v10 }
 0x14a   : > { %v3031_v55 = vpop.eup %3030  ;;  %v2483_v42 = vmul.f32 -1.442695, %v3687_v47  ;;  %1617 = vrot.lane.b32.xlu1 %v3673_v17, %s3084_s14  ;;  %3050 = vpow2.f32 %v2480_v36 }
 0x14b   : > { %v3033_v11 = vpop.eup %3032  ;;  %v1456_v61 = vadd.f32 1.0, %v3031_v55  ;;  %v2482_v34 = vmul.f32 -1.442695, %v3690_v52  ;;  %1513 = vrot.lane.b32.xlu0 %v3027_v7, %s3085_s16  ;;  %3052 = vrcp.f32 %v1451_v45 }
 0x14c   : > { %v3035_v46 = vpop.eup %3034 }
 0x14d   : > { %v3037_v13 = vpop.eup %3036  ;;  %3054 = vrcp.f32 %v1456_v61 }
 0x14e   : > { %v3039_v15 = vpop.eup %3038  ;;  %3056 = vpow2.f32 %v2483_v42  ;;  %1517 = vrot.lane.b32.xlu1 %v3035_v46, %s3085_s16  ;;  %v1455_v38 = vadd.f32 1.0, %v3037_v13 }
 0x14f   : > { %v3041_v50 = vpop.eup %3040  ;;  %v1458_v53 = vadd.f32 1.0, %v3039_v15  ;;  %3058 = vpow2.f32 %v2482_v34  ;;  %1511 = vrot.lane.b32.xlu0 %v3033_v11, %s3085_s16 }
 0x150   : > { %v3043_v2 = vpop.eup %3042  ;;  %3060 = vrcp.f32 %v1453_v35 }
 0x151   : > { %v3045_v56 = vpop.eup %3044  ;;  %3062 = vrcp.f32 %v1458_v53 }
 0x152   : > { %v3047_v59 = vpop.eup %3046  ;;  %1521 = vrot.lane.b32.xlu1 %v3043_v2, %s3085_s16  ;;  %3064 = vrcp.f32 %v1455_v38  ;;  %v1457_v62 = vadd.f32 1.0, %v3045_v56 }
 0x153   : > { %v1460_v6 = vadd.f32 1.0, %v3047_v59  ;;  %1515 = vrot.lane.b32.xlu0 %v3041_v50, %s3085_s16  ;;  %v3049_v51 = vpop.eup %3048 }
 0x154   : > { %v3051_v21 = vpop.eup %3050 }
 0x155   : > { %v3053_v39 = vpop.eup %3052  ;;  %3066 = vrcp.f32 %v1460_v6  ;;  %v1459_v23 = vadd.f32 1.0, %v3051_v21 }
 0x156   : > { %1525 = vrot.lane.b32.xlu1 %v3049_v51, %s3085_s16  ;;  %3068 = vrcp.f32 %v1457_v62 }
 0x157   : > { %v3055_v3 = vpop.eup %3054  ;;  %1519 = vrot.lane.b32.xlu0 %v3053_v39, %s3085_s16 }
 0x158   : > { %v3057_v22 = vpop.eup %3056 }
 0x159   : > { %v3059_v24 = vpop.eup %3058  ;;  %v1462_v40 = vadd.f32 1.0, %v3057_v22 }
 0x15a   : > { %v3061_v57 = vpop.eup %3060  ;;  %1529 = vrot.lane.b32.xlu1 %v3055_v3, %s3085_s16  ;;  %v1461_v63 = vadd.f32 1.0, %v3059_v24 }
 0x15b   : > { %3070 = vrcp.f32 %v1462_v40  ;;  %1523 = vrot.lane.b32.xlu0 %v3061_v57, %s3085_s16  ;;  %v3063_v37 = vpop.eup %3062 }
 0x15c   : > { %3072 = vrcp.f32 %v1459_v23  ;;  %v3065_v1 = vpop.eup %3064  ;;  %v3739_v23 = vld [vmem:[%s3827_s3 + $0x8] sm:$0xff] }
 0x15d   : > { %3074 = vrcp.f32 %v1461_v63 }
 0x15e   : > { %1533 = vrot.lane.b32.xlu1 %v3063_v37, %s3085_s16 }
 0x15f   : > { %1527 = vrot.lane.b32.xlu0 %v3065_v1, %s3085_s16  ;;  %v3067_v4 = vpop.eup %3066 }
 0x160   : > { %v3069_v5 = vpop.eup %3068 }
 0x162   : > { %1537 = vrot.lane.b32.xlu1 %v3067_v4, %s3085_s16 }
 0x163   : > { %1531 = vrot.lane.b32.xlu0 %v3069_v5, %s3085_s16 }
 0x165   : > { %v3071_v8 = vpop.eup %3070 }
 0x166   : > { %v3073_v12 = vpop.eup %3072  ;;  %1541 = vrot.lane.b32.xlu1 %v3071_v8, %s3085_s16 }
 0x167   : > { %1535 = vrot.lane.b32.xlu0 %v3073_v12, %s3085_s16  ;;  %v3075_v14 = vpop.eup %3074 }
 0x16a   : > { %1621 = vrot.lane.b32.xlu1 %v3687_v47, %s3084_s14 }
 0x16b   : > { %1539 = vrot.lane.b32.xlu0 %v3075_v14, %s3085_s16 }
 0x16f   : > { %1619 = vrot.lane.b32.xlu0 %v3690_v52, %s3084_s14 }
 0x1a0   : > { %v1594_v16 = vpop.permute.xlu1 %1593 }
 0x1a4   : > { %v1592_v27 = vpop.permute.xlu1 %1591 }
 0x1a5   : > { %v1596_v28 = vpop.permute.xlu0 %1595 }
 0x1a8   : > { %v1598_v29 = vpop.permute.xlu1 %1597 }
 0x1a9   : > { %v1600_v30 = vpop.permute.xlu0 %1599 }
 0x1ac   : > { %v1602_v25 = vpop.permute.xlu1 %1601 }
 0x1ad   : > { %v1604_v9 = vpop.permute.xlu0 %1603 }
 0x1b0   : > { %v1606_v26 = vpop.permute.xlu1 %1605 }
 0x1b1   : > { %v1608_v36 = vpop.permute.xlu0 %1607 }
 0x1b4   : > { %v1610_v41 = vpop.permute.xlu1 %1609 }
 0x1b5   : > { %v3723_v7 = vpop.permute.xlu0 %1611 }
 0x1b8   : > { %v1614_v45 = vpop.permute.xlu1 %1613 }
 0x1b9   : > { %v3725_v10 = vpop.permute.xlu0 %1615 }
 0x1bc   : > { %v3727_v55 = vpop.permute.xlu1 %1617 }
 0x1bd   : > { %v1514_v42 = vpop.permute.xlu0 %1513 }
 0x1be   : > { %v1560_v11 = vadd.f32 %v1514_v42, %v3599_v18 }
 0x1c0   : > { %v1518_v61 = vpop.permute.xlu1 %1517  ;;  %v1640_v35 = vadd.f32 %v1594_v16, %v1560_v11 }
 0x1c1   : > { %v1562_v34 = vadd.f32 %v1518_v61, %v3609_v31  ;;  %v1512_v46 = vpop.permute.xlu0 %1511 }
 0x1c2   : > { %v1559_v13 = vadd.f32 %v1512_v46, %v3602_v19  ;;  %v1656_v38 = vmax.f32 %v1640_v35, 0.0 }
 0x1c3   : > { %v1642_v53 = vadd.f32 %v1598_v29, %v1562_v34 }
 0x1c4   : > { %v1639_v15 = vadd.f32 %v1592_v27, %v1559_v13  ;;  %v1522_v50 = vpop.permute.xlu1 %1521 }
 0x1c5   : > { %v1516_v2 = vpop.permute.xlu0 %1515  ;;  %v1564_v59 = vadd.f32 %v1522_v50, %v3621_v32  ;;  %v1658_v21 = vmax.f32 %v1642_v53, 0.0 }
 0x1c6   : > { %v1655_v56 = vmax.f32 %v1639_v15, 0.0  ;;  %v1561_v6 = vadd.f32 %v1516_v2, %v3612_v33 }
 0x1c7   : > { %v1644_v31 = vadd.f32 %v1602_v25, %v1564_v59 }
 0x1c8   : > { %v1641_v51 = vadd.f32 %v1596_v28, %v1561_v6  ;;  %v1526_v62 = vpop.permute.xlu1 %1525  ;;  %v2905_v18 = vpack.c.bf16 %v1656_v38, %v1655_v56 }
 0x1c9   : > { %v1520_v39 = vpop.permute.xlu0 %1519  ;;  %v1566_v22 = vadd.f32 %v1526_v62, %v3633_v43  ;;  %v1660_v63 = vmax.f32 %v1644_v31, 0.0 }
 0x1ca   : > { %v1657_v3 = vmax.f32 %v1641_v51, 0.0  ;;  %v1563_v19 = vadd.f32 %v1520_v39, %v3624_v48  ;;  %2906 = vmatprep.subr.bf16.mxu1 %v2905_v18 }
 0x1cb   : > { %2908 = vmatpush3.bf16.msra.mxu1 %v2905_v18  ;;  %v1646_v37 = vadd.f32 %v1606_v26, %v1566_v22 }
 0x1cc   : > { %v1643_v32 = vadd.f32 %v1600_v30, %v1563_v19  ;;  %v1530_v33 = vpop.permute.xlu1 %1529  ;;  %v2909_v24 = vpack.c.bf16 %v1658_v21, %v1657_v3 }
 0x1cd   : > { %v1568_v40 = vadd.f32 %v1530_v33, %v3645_v20  ;;  %v1524_v57 = vpop.permute.xlu0 %1523  ;;  %v1662_v20 = vmax.f32 %v1646_v37, 0.0 }
 0x1ce   : > { %v1659_v1 = vmax.f32 %v1643_v32, 0.0  ;;  %v1565_v43 = vadd.f32 %v1524_v57, %v3636_v49  ;;  %2910 = vmatprep.subr.bf16.mxu1 %v2909_v24  ;;  %2814 = vmatmul.mubr.msk.f32.vlgmr.msra.gmra.mrb[16].mxu1 %vm1673_vm5, %v3739_v23 }
 0x1cf   : > { %2912 = vmatpush3.bf16.msra.mxu1 %v2909_v24  ;;  %2820 = vmatprep.mubr.msk.f32.mxu1 %vm1673_vm5, %v3702_v54  ;;  %v1648_v8 = vadd.f32 %v1610_v41, %v1568_v40 }
 0x1d0   : > { %v1645_v48 = vadd.f32 %v1604_v9, %v1565_v43  ;;  %v1534_v4 = vpop.permute.xlu1 %1533  ;;  %v2913_v5 = vpack.c.bf16 %v1660_v63, %v1659_v1 }
 0x1d1   : > { %v1528_v12 = vpop.permute.xlu0 %1527  ;;  %v1570_v16 = vadd.f32 %v1534_v4, %v3659_v58  ;;  %v1664_v30 = vmax.f32 %v1648_v8, 0.0 }
 0x1d2   : > { %v1661_v14 = vmax.f32 %v1645_v48, 0.0  ;;  %v1567_v27 = vadd.f32 %v1528_v12, %v3648_v60  ;;  %2914 = vmatprep.subr.bf16.mxu1 %v2913_v5  ;;  %2821 = vmatmul.mubr.msk.f32.vlgmr.msra.gmra.mrb[18].mxu1 %vm1673_vm5, %v3739_v23 }
 0x1d3   : > { %2916 = vmatpush3.bf16.msra.mxu1 %v2913_v5  ;;  %2827 = vmatprep.mubr.msk.f32.mxu1 %vm1673_vm5, %v3702_v54  ;;  %v1650_v9 = vadd.f32 %v1614_v45, %v1570_v16 }
 0x1d4   : > { %v1647_v49 = vadd.f32 %v1608_v36, %v1567_v27  ;;  %v1538_v28 = vpop.permute.xlu1 %1537  ;;  %v2917_v29 = vpack.c.bf16 %v1662_v20, %v1661_v14 }
 0x1d5   : > { %v1532_v25 = vpop.permute.xlu0 %1531  ;;  %v1572_v41 = vadd.f32 %v1538_v28, %v3673_v17  ;;  %v1666_v61 = vmax.f32 %v1650_v9, 0.0 }
 0x1d6   : > { %v1663_v26 = vmax.f32 %v1647_v49, 0.0  ;;  %v1569_v58 = vadd.f32 %v1532_v25, %v3662_v0  ;;  %2918 = vmatprep.subr.bf16.mxu1 %v2917_v29  ;;  %2828 = vmatmul.mubr.msk.f32.vlgmr.msra.gmra.mrb[20].mxu1 %vm1673_vm5, %v3739_v23 }
 0x1d7   : > { %2920 = vmatpush3.bf16.msra.mxu1 %v2917_v29  ;;  %2834 = vmatprep.mubr.msk.f32.mxu1 %vm1673_vm5, %v3702_v54  ;;  %v1652_v45 = vadd.f32 %v3727_v55, %v1572_v41 }
 0x1d8   : > { %v1649_v60 = vadd.f32 %v3723_v7, %v1569_v58  ;;  %v1542_v36 = vpop.permute.xlu1 %1541  ;;  %v2921_v42 = vpack.c.bf16 %v1664_v30, %v1663_v26 }
 0x1d9   : > { %v1536_v11 = vpop.permute.xlu0 %1535  ;;  %v1668_v13 = vmax.f32 %v1652_v45, 0.0  ;;  %v1574_v15 = vadd.f32 %v1542_v36, %v3687_v47 }
 0x1da   : > { %v1665_v34 = vmax.f32 %v1649_v60, 0.0  ;;  %v1571_v17 = vadd.f32 %v1536_v11, %v3676_v44  ;;  %2922 = vmatprep.subr.bf16.mxu1 %v2921_v42  ;;  %2835 = vmatmul.mubr.msk.f32.vlgmr.msra.gmra.mrb[22].mxu1 %vm1673_vm5, %v3739_v23 }
 0x1db   : > { %2924 = vmatpush3.bf16.msra.mxu1 %v2921_v42  ;;  %2841 = vmatprep.mubr.msk.f32.mxu1 %vm1673_vm5, %v3702_v54 }
 0x1dc   : > { %v1651_v0 = vadd.f32 %v3725_v10, %v1571_v17  ;;  %v2925_v7 = vpack.c.bf16 %v1666_v61, %v1665_v34  ;;  %v1622_v46 = vpop.permute.xlu1 %1621 }
 0x1dd   : > { %v1540_v35 = vpop.permute.xlu0 %1539  ;;  %v1654_v44 = vadd.f32 %v1622_v46, %v1574_v15 }
 0x1de   : > { %v1667_v55 = vmax.f32 %v1651_v0, 0.0  ;;  %2926 = vmatprep.subr.bf16.mxu1 %v2925_v7  ;;  %2842 = vmatmul.mubr.msk.f32.vlgmr.msra.gmra.mrb[24].mxu1 %vm1673_vm5, %v3739_v23  ;;  %v1573_v50 = vadd.f32 %v1540_v35, %v3690_v52 }
 0x1df   : > { %2928 = vmatpush3.bf16.msra.mxu1 %v2925_v7  ;;  %2848 = vmatprep.mubr.msk.f32.mxu1 %vm1673_vm5, %v3702_v54  ;;  %v1670_v47 = vmax.f32 %v1654_v44, 0.0 }
 0x1e0   : > { %v2929_v10 = vpack.c.bf16 %v1668_v13, %v1667_v55 }
 0x1e1   : > { %v1620_v53 = vpop.permute.xlu0 %1619 }
 0x1e2   : > { %v1653_v2 = vadd.f32 %v1620_v53, %v1573_v50  ;;  %2930 = vmatprep.subr.bf16.mxu1 %v2929_v10  ;;  %2849 = vmatmul.mubr.msk.f32.vlgmr.msra.gmra.mrb[26].mxu1 %vm1673_vm5, %v3739_v23 }
 0x1e3   : > { %2932 = vmatpush3.bf16.msra.mxu1 %v2929_v10  ;;  %2855 = vmatprep.mubr.msk.f32.mxu1 %vm1673_vm5, %v3702_v54 }
 0x1e4   : > { %v1669_v38 = vmax.f32 %v1653_v2, 0.0 }
 0x1e6   : > { %v2933_v56 = vpack.c.bf16 %v1670_v47, %v1669_v38  ;;  %2856 = vmatmul.mubr.msk.f32.vlgmr.msra.gmra.mrb[28].mxu1 %vm1673_vm5, %v3739_v23 }
 0x1e7   : > { %2862 = vmatprep.mubr.msk.f32.mxu1 %vm1673_vm5, %v3702_v54 }
 0x1e8   : > { %2934 = vmatprep.subr.bf16.mxu1 %v2933_v56 }
 0x1e9   : > { %2936 = vmatpush3.bf16.msra.mxu1 %v2933_v56 }
 0x1ec   : > { %2863 = vmatmul.mubr.msk.f32.vlgmr.msra.gmra.mrb[30].mxu1 %vm1673_vm5, %v3739_v23 }
 0x2a1   : > { %v2815_v52 = vpop.f32.mrb[16].mxu1 }
 0x2a2   : > { %1756 = vst.msk [vmem:[%s3787_s25 + $0x8] sm:$0xff] %vm304_vm1, %v2815_v52  ;;  %v1746_v54 = vpop.f32.mrb[17].mxu1 }
 0x2a3   : > { %1755 = vst.msk [vmem:[%s3787_s25] sm:$0xff] %vm304_vm1, %v1746_v54 }
 0x2a5   : > { %v2822_v59 = vpop.f32.mrb[18].mxu1 }
 0x2a6   : > { %2489 = vst.msk [vmem:[%s3787_s25 + $0x18] sm:$0xff] %vm304_vm1, %v2822_v59  ;;  %v1823_v6 = vpop.f32.mrb[19].mxu1 }
 0x2a7   : > { %2488 = vst.msk [vmem:[%s3787_s25 + $0x10] sm:$0xff] %vm304_vm1, %v1823_v6 }
 0x2a9   : > { %v2829_v51 = vpop.f32.mrb[20].mxu1 }
 0x2aa   : > { %2493 = vst.msk [vmem:[%s3787_s25 + $0x28] sm:$0xff] %vm304_vm1, %v2829_v51  ;;  %v1901_v62 = vpop.f32.mrb[21].mxu1 }
 0x2ab   : > { %2492 = vst.msk [vmem:[%s3787_s25 + $0x20] sm:$0xff] %vm304_vm1, %v1901_v62 }
 0x2ad   : > { %v2836_v18 = vpop.f32.mrb[22].mxu1 }
 0x2ae   : > { %2497 = vst.msk [vmem:[%s3787_s25 + $0x38] sm:$0xff] %vm304_vm1, %v2836_v18  ;;  %v1979_v21 = vpop.f32.mrb[23].mxu1 }
 0x2af   : > { %2496 = vst.msk [vmem:[%s3787_s25 + $0x30] sm:$0xff] %vm304_vm1, %v1979_v21 }
 0x2b1   : > { %v2843_v39 = vpop.f32.mrb[24].mxu1 }
 0x2b2   : > { %2501 = vst.msk [vmem:[%s3787_s25 + $0x48] sm:$0xff] %vm304_vm1, %v2843_v39  ;;  %v2057_v31 = vpop.f32.mrb[25].mxu1 }
 0x2b3   : > { %2500 = vst.msk [vmem:[%s3787_s25 + $0x40] sm:$0xff] %vm304_vm1, %v2057_v31 }
 0x2b5   : > { %v2850_v3 = vpop.f32.mrb[26].mxu1 }
 0x2b6   : > { %2505 = vst.msk [vmem:[%s3787_s25 + $0x58] sm:$0xff] %vm304_vm1, %v2850_v3  ;;  %v2135_v22 = vpop.f32.mrb[27].mxu1 }
 0x2b7   : > { %2504 = vst.msk [vmem:[%s3787_s25 + $0x50] sm:$0xff] %vm304_vm1, %v2135_v22 }
 0x2b9   : > { %v2857_v19 = vpop.f32.mrb[28].mxu1 }
 0x2ba   : > { %2509 = vst.msk [vmem:[%s3787_s25 + $0x68] sm:$0xff] %vm304_vm1, %v2857_v19  ;;  %v2213_v23 = vpop.f32.mrb[29].mxu1 }
 0x2bb   : > { %2508 = vst.msk [vmem:[%s3787_s25 + $0x60] sm:$0xff] %vm304_vm1, %v2213_v23 }
 0x2bf   : > { %v2864_v32 = vpop.f32.mrb[30].mxu1 }
 0x2c0   : > { %2513 = vst.msk [vmem:[%s3787_s25 + $0x78] sm:$0xff] %vm304_vm1, %v2864_v32  ;;  %v2291_v33 = vpop.f32.mrb[31].mxu1 }
 0x2c1   : > { %2512 = vst.msk [vmem:[%s3787_s25 + $0x70] sm:$0xff] %vm304_vm1, %v2291_v33 }
 0x2c2 PF: > { %s14_s15 = sadd.s32 1, %s3082_s15  }
 0x2c3   : > { %p11_p4 = scmp.ge.s32.totalorder %s14_s15, 4  }
 0x2c5   :  { %13 = sbr.rel (!%p11_p4) target bundleno = 1 (0x1), region = 77 }

</bundles_post_ra>
